<compile_context>
chip_gen: v5e
topology: v5e:2x2
jax: 0.10.0
libtpu: 0.0.40
codegen_flags: <defaults>
</compile_context>

<pallas_src>
import jax
import jax.numpy as jnp
from jax import lax
from jax.experimental import pallas as pl
from jax.experimental.pallas import tpu as pltpu

LANE = 128


def _vmem():
    return pl.BlockSpec(memory_space=pltpu.MemorySpace.VMEM)


def _round_up(x, m):
    return ((x + m - 1) // m) * m


# ----------------------------------------------------------------------------
# Static lane layouts of the packed weight / bias slabs (shared by the packer
# and the kernel factory).  Every segment starts at a 128-lane boundary.
# ----------------------------------------------------------------------------
def _layouts(cfg):
    D = cfg["cate_dim"]
    H = cfg["cate_dim"]                 # gru_hidden_size = cate_dim
    HS = cfg["hidden_size"]
    GH = cfg["generator_hidden_size"]
    P = cfg["prefix_size"]
    O = cfg["num_hidden_layers"] * 2 * HS
    NC = cfg["n_cates"] + 1

    w_entries = [                        # (name, rows, cols)
        ("emb",   NC, D),
        ("wih",   D,  3 * H),
        ("whh",   H,  3 * H),
        ("pf_w1", H,  HS),
        ("pf_w2", HS, P * HS),
        ("tr_w1", HS, GH),
        ("tr_w2", GH, O),
    ]
    b_entries = [                        # (name, cols)
        ("bih_eff", 3 * H),              # b_ih with b_hh[r], b_hh[z] folded in
        ("bhh_n",   H),                  # only the n-gate lanes of b_hh
        ("pf_b1",   HS),
        ("pf_b2",   P * HS),
        ("tr_b1",   GH),
        ("tr_b2",   O),
    ]
    w_layout, off = {}, 0
    for name, rows, cols in w_entries:
        w_layout[name] = (rows, cols, off)
        off += _round_up(cols, LANE)
    w_lanes = off
    b_layout, off = {}, 0
    for name, cols in b_entries:
        b_layout[name] = (cols, off)
        off += _round_up(cols, LANE)
    b_lanes = off
    w_rows = max(rows for _, rows, _ in w_entries)   # 32 for this config
    return w_layout, w_lanes, w_rows, b_layout, b_lanes


# ----------------------------------------------------------------------------
# Parameter construction (deterministic, synthetic).  GRU weights stored fused:
# gate order (r, z, n) concatenated along the last dim, pre-transposed.
# ----------------------------------------------------------------------------
def init_params(cfg, key):
    D = cfg["cate_dim"]
    H = cfg["cate_dim"]
    HS = cfg["hidden_size"]
    GH = cfg["generator_hidden_size"]
    ks = jax.random.split(key, 13)

    def nrm(k, shape):
        return 0.1 * jax.random.normal(k, shape, dtype=jnp.float32)

    emb = nrm(ks[0], (cfg["n_cates"] + 1, D)).at[0].set(0.0)   # padding_idx=0

    return dict(
        emb=emb,
        gru_wih=nrm(ks[1], (D, 3 * H)),
        gru_whh=nrm(ks[2], (H, 3 * H)),
        gru_bih=nrm(ks[3], (1, 3 * H)),
        gru_bhh=nrm(ks[4], (1, 3 * H)),
        # prefix_head: Linear(H, HS) -> Tanh -> Linear(HS, HS*prefix_size)
        pf_w1=nrm(ks[5], (H, HS)),
        pf_b1=nrm(ks[6], (1, HS)),
        pf_w2=nrm(ks[7], (HS, HS * cfg["prefix_size"])),
        pf_b2=nrm(ks[8], (1, HS * cfg["prefix_size"])),
        # transform: Linear(HS, GH) -> Tanh -> Linear(GH, L*2*HS)
        tr_w1=nrm(ks[9], (HS, GH)),
        tr_b1=nrm(ks[10], (1, GH)),
        tr_w2=nrm(ks[11], (GH, cfg["num_hidden_layers"] * 2 * HS)),
        tr_b2=nrm(ks[12], (1, cfg["num_hidden_layers"] * 2 * HS)),
    )


# ----------------------------------------------------------------------------
# Pack the 13 parameters into two 128-lane-aligned VMEM slabs (done once).
# Also folds b_hh[r], b_hh[z] into b_ih so the GRU step only adds b_hh[n].
# ----------------------------------------------------------------------------
def pack_params(params, cfg):
    H = cfg["cate_dim"]
    w_layout, w_lanes, w_rows, b_layout, b_lanes = _layouts(cfg)

    bih = params["gru_bih"]
    bhh = params["gru_bhh"]
    bih_eff = bih + jnp.concatenate(
        [bhh[:, 0:2 * H], jnp.zeros((1, H), jnp.float32)], axis=1)
    bhh_n = bhh[:, 2 * H:3 * H]

    w_arrays = dict(emb=params["emb"], wih=params["gru_wih"], whh=params["gru_whh"],
                    pf_w1=params["pf_w1"], pf_w2=params["pf_w2"],
                    tr_w1=params["tr_w1"], tr_w2=params["tr_w2"])
    b_arrays = dict(bih_eff=bih_eff, bhh_n=bhh_n,
                    pf_b1=params["pf_b1"], pf_b2=params["pf_b2"],
                    tr_b1=params["tr_b1"], tr_b2=params["tr_b2"])

    w_slab = jnp.zeros((w_rows, w_lanes), jnp.float32)
    for name, (rows, cols, off) in w_layout.items():
        w_slab = w_slab.at[:rows, off:off + cols].set(w_arrays[name])
    b_slab = jnp.zeros((1, b_lanes), jnp.float32)
    for name, (cols, off) in b_layout.items():
        b_slab = b_slab.at[:, off:off + cols].set(b_arrays[name])
    return dict(w=w_slab, b=b_slab)


# ----------------------------------------------------------------------------
# Fused kernel factory: embedding lookup -> GRU (masked, last-valid state)
# -> prefix_head -> batched transform.  All shapes closed over statically.
# ----------------------------------------------------------------------------
def make_fused_kernel(cfg, T, Bp):
    D = cfg["cate_dim"]
    H = cfg["cate_dim"]
    HS = cfg["hidden_size"]
    GH = cfg["generator_hidden_size"]
    P = cfg["prefix_size"]
    w_layout, _, Rw, b_layout, _ = _layouts(cfg)

    def kernel(ids_ref, hlen_ref, w_ref, b_ref, out_ref):
        def wseg(name, rows):
            _, cols, off = w_layout[name]
            return w_ref[0:rows, off:off + cols]

        def bseg(name):
            cols, off = b_layout[name]
            return b_ref[:, off:off + cols]

        # ---- packed parameter slices (static, 128-lane-aligned segment starts).
        emb = wseg("emb", Rw)            # (Rw, D); rows >= n_cates+1 are zero
        wih = wseg("wih", D)             # (D, 3H)
        whh = wseg("whh", H)             # (H, 3H)
        pf_w1 = wseg("pf_w1", H)
        pf_w2 = wseg("pf_w2", HS)
        tr_w1 = wseg("tr_w1", HS)
        tr_w2 = wseg("tr_w2", GH)
        bih_eff = bseg("bih_eff")        # (1, 3H) = b_ih + [b_hh_r, b_hh_z, 0]
        bhh_n = bseg("bhh_n")            # (1, H)
        pf_b1 = bseg("pf_b1")
        pf_b2 = bseg("pf_b2")
        tr_b1 = bseg("tr_b1")
        tr_b2 = bseg("tr_b2")

        # ---- embedding lookup on the MXU + GRU input projection, both hoisted
        #      out of the recurrence (ids are time-major: row = t*Bp + b).
        ids = ids_ref[...]                                               # (T*Bp, 1) int32
        onehot = (ids == lax.broadcasted_iota(jnp.int32, (T * Bp, Rw), 1)
                  ).astype(jnp.float32)                                  # (T*Bp, Rw)
        seq = jnp.dot(onehot, emb, preferred_element_type=jnp.float32)   # (T*Bp, D)
        xp_all = (jnp.dot(seq, wih, preferred_element_type=jnp.float32)
                  + bih_eff)                                             # (T*Bp, 3H)

        # ---- GRU recurrence: fully unrolled, state frozen once t >= hlen
        #      (exactly reproduces pack_padded + take-at-(hlen-1)).
        hlen = hlen_ref[...]                                             # (Bp, 1) int32
        h = jnp.zeros((Bp, H), jnp.float32)
        for t in range(T):
            xp = xp_all[t * Bp:(t + 1) * Bp, :]                          # aligned sublane slice
            hp = jnp.dot(h, whh, preferred_element_type=jnp.float32)     # (Bp, 3H), no bias
            r = jax.nn.sigmoid(xp[:, 0:H] + hp[:, 0:H])
            z = jax.nn.sigmoid(xp[:, H:2 * H] + hp[:, H:2 * H])
            n = jnp.tanh(xp[:, 2 * H:3 * H] + r * (hp[:, 2 * H:3 * H] + bhh_n))
            h_new = n + z * (h - n)                                      # == (1-z)*n + z*h
            h = jnp.where(hlen > t, h_new, h)

        # ---- prefix_head: Linear -> Tanh -> Linear (stays in vregs).
        p1 = jnp.tanh(jnp.dot(h, pf_w1, preferred_element_type=jnp.float32) + pf_b1)
        prefix = (jnp.dot(p1, pf_w2, preferred_element_type=jnp.float32)
                  + pf_b2)                                               # (Bp, P*HS)

        # ---- transform, batched over all Bp*P prefix tokens: stack the P
        #      lane-chunks along sublanes (each chunk is a full (8, HS) tile,
        #      so the concat is free).  Rows come out (p, b)-ordered; the
        #      wrapper does the final reshape/transpose.
        tok = jnp.concatenate(
            [prefix[:, p * HS:(p + 1) * HS] for p in range(P)], axis=0)  # (P*Bp, HS)
        t1 = jnp.tanh(jnp.dot(tok, tr_w1, preferred_element_type=jnp.float32) + tr_b1)
        out_ref[...] = (jnp.dot(t1, tr_w2, preferred_element_type=jnp.float32)
                        + tr_b2)                                         # (P*Bp, O)

    return kernel


# ----------------------------------------------------------------------------
# Forward pass: only tiny int32 padding/transpose glue outside the kernel.
# ----------------------------------------------------------------------------
def prompt_generator_forward(packed, hcate, hlen, cfg):
    B, T = hcate.shape
    D = cfg["cate_dim"]
    H = cfg["cate_dim"]
    HS = cfg["hidden_size"]
    GH = cfg["generator_hidden_size"]
    P = cfg["prefix_size"]
    O = cfg["num_hidden_layers"] * 2 * HS
    _, w_lanes, Rw, _, b_lanes = _layouts(cfg)

    # Pad batch to the 8-sublane boundary; ids go in time-major (row = t*Bp+b).
    Bp = max(8, ((B + 7) // 8) * 8)
    pad = Bp - B
    ids_tm = jnp.pad(hcate.astype(jnp.int32), ((0, pad), (0, 0))).T.reshape(T * Bp, 1)
    hlen_col = jnp.pad(hlen.astype(jnp.int32), (0, pad)).reshape(Bp, 1)

    cost = pl.CostEstimate(
        flops=2 * (T * Bp * Rw * D + T * Bp * D * 3 * H + T * Bp * H * 3 * H
                   + Bp * H * HS + Bp * HS * P * HS
                   + Bp * P * HS * GH + Bp * P * GH * O),
        transcendentals=T * Bp * 3 * H + Bp * HS + Bp * P * GH,
        bytes_accessed=4 * (T * Bp + Bp + Rw * w_lanes + b_lanes + Bp * P * O),
    )

    out = pl.pallas_call(
        make_fused_kernel(cfg, T, Bp),
        out_shape=jax.ShapeDtypeStruct((P * Bp, O), jnp.float32),
        in_specs=[_vmem()] * 4,
        out_specs=_vmem(),
        cost_estimate=cost,
    )(ids_tm, hlen_col, packed["w"], packed["b"])

    # (p, b)-ordered rows -> (B, P, O); tiny fixup, fused under jit.
    return jnp.transpose(out.reshape(P, Bp, O)[:, :B, :], (1, 0, 2))


# ----------------------------------------------------------------------------
# Pure-JAX reference (for correctness check of the Pallas path).
# ----------------------------------------------------------------------------
def reference_forward(params, hcate, hlen, cfg):
    B, T = hcate.shape
    HS = cfg["hidden_size"]
    P = cfg["prefix_size"]
    L = cfg["num_hidden_layers"]
    H = cfg["cate_dim"]

    seq = params["emb"][hcate].astype(jnp.float32)               # (B, T, D)
    wih, whh = params["gru_wih"], params["gru_whh"]
    bih, bhh = params["gru_bih"], params["gru_bhh"]

    def cell(h, inp):
        x, m = inp
        xp = x @ wih + bih
        hp = h @ whh + bhh
        r = jax.nn.sigmoid(xp[:, 0:H] + hp[:, 0:H])
        z = jax.nn.sigmoid(xp[:, H:2 * H] + hp[:, H:2 * H])
        n = jnp.tanh(xp[:, 2 * H:] + r * hp[:, 2 * H:])
        h_new = (1.0 - z) * n + z * h
        return m * h_new + (1.0 - m) * h, None

    t_idx = jnp.arange(T, dtype=jnp.int32)[:, None]
    mask = (t_idx < hlen[None, :].astype(jnp.int32)).astype(jnp.float32)[:, :, None]
    xs = (jnp.transpose(seq, (1, 0, 2)), mask)
    h_final, _ = lax.scan(cell, jnp.zeros((B, H), jnp.float32), xs)

    pref = jnp.tanh(h_final @ params["pf_w1"] + params["pf_b1"])
    pref = pref @ params["pf_w2"] + params["pf_b2"]
    pref = pref.reshape(B * P, HS)
    out = jnp.tanh(pref @ params["tr_w1"] + params["tr_b1"])
    out = out @ params["tr_w2"] + params["tr_b2"]
    return out.reshape(B, P, L * 2 * HS)


if __name__ == "__main__":
    cfg = dict(
        n_cates=10,
        cate_dim=32,              # also the GRU hidden size
        hidden_size=32,
        prefix_size=4,
        generator_hidden_size=32,
        num_hidden_layers=2,
        gru_num_layers=1,
        hidden_dropout_prob=0.1,  # unused because gru_num_layers == 1
    )

    key = jax.random.PRNGKey(0)
    pkey, dkey = jax.random.split(key)
    params = init_params(cfg, pkey)
    packed = pack_params(params, cfg)

    B, T = 2, 8
    hlen = jnp.array([5, 8], dtype=jnp.int32)
    hcate = jax.random.randint(dkey, (B, T), 1, cfg["n_cates"] + 1, dtype=jnp.int32)
    # zero-out (padding id 0) positions beyond each sequence length
    pad_mask = jnp.arange(T, dtype=jnp.int32)[None, :] < hlen[:, None]
    hcate = jnp.where(pad_mask, hcate, 0)

    fwd = jax.jit(lambda pk, hc, hl: prompt_generator_forward(pk, hc, hl, cfg))
    out = jax.block_until_ready(fwd(packed, hcate, hlen))

    ref = reference_forward(params, hcate, hlen, cfg)
    assert out.shape == (B, cfg["prefix_size"],
                         cfg["num_hidden_layers"] * 2 * cfg["hidden_size"])
    assert jnp.allclose(out, ref, rtol=1e-4, atol=2e-5), "mismatch vs reference"

    print("KERNEL_OK")
</pallas_src>

<mosaic_0001>
module attributes {stable_mosaic.version = 11 : i64} {
  func.func @kernel(%arg0: memref<64x1xi32, #tpu.memory_space<vmem>>, %arg1: memref<8x1xi32, #tpu.memory_space<vmem>>, %arg2: memref<32x896xf32, #tpu.memory_space<vmem>>, %arg3: memref<1x768xf32, #tpu.memory_space<vmem>>, %arg4: memref<32x128xf32, #tpu.memory_space<vmem>>) attributes {dimension_semantics = [], scalar_prefetch = 0 : i64, scratch_operands = 0 : i64, tpu.core_type = #tpu.core_type<tc>} {
    %c0 = arith.constant 0 : index
    %c0_0 = arith.constant 0 : index
    %0 = vector.load %arg2[%c0, %c0_0] : memref<32x896xf32, #tpu.memory_space<vmem>>, vector<32x32xf32>
    %c0_1 = arith.constant 0 : index
    %c128 = arith.constant 128 : index
    %1 = vector.load %arg2[%c0_1, %c128] : memref<32x896xf32, #tpu.memory_space<vmem>>, vector<32x96xf32>
    %c0_2 = arith.constant 0 : index
    %c256 = arith.constant 256 : index
    %2 = vector.load %arg2[%c0_2, %c256] : memref<32x896xf32, #tpu.memory_space<vmem>>, vector<32x96xf32>
    %c0_3 = arith.constant 0 : index
    %c384 = arith.constant 384 : index
    %3 = vector.load %arg2[%c0_3, %c384] : memref<32x896xf32, #tpu.memory_space<vmem>>, vector<32x32xf32>
    %c0_4 = arith.constant 0 : index
    %c512 = arith.constant 512 : index
    %4 = vector.load %arg2[%c0_4, %c512] : memref<32x896xf32, #tpu.memory_space<vmem>>, vector<32x128xf32>
    %c0_5 = arith.constant 0 : index
    %c640 = arith.constant 640 : index
    %5 = vector.load %arg2[%c0_5, %c640] : memref<32x896xf32, #tpu.memory_space<vmem>>, vector<32x32xf32>
    %c0_6 = arith.constant 0 : index
    %c768 = arith.constant 768 : index
    %6 = vector.load %arg2[%c0_6, %c768] : memref<32x896xf32, #tpu.memory_space<vmem>>, vector<32x128xf32>
    %c0_7 = arith.constant 0 : index
    %c0_8 = arith.constant 0 : index
    %7 = vector.load %arg3[%c0_7, %c0_8] : memref<1x768xf32, #tpu.memory_space<vmem>>, vector<1x96xf32>
    %c0_9 = arith.constant 0 : index
    %c128_10 = arith.constant 128 : index
    %8 = vector.load %arg3[%c0_9, %c128_10] : memref<1x768xf32, #tpu.memory_space<vmem>>, vector<1x32xf32>
    %c0_11 = arith.constant 0 : index
    %c256_12 = arith.constant 256 : index
    %9 = vector.load %arg3[%c0_11, %c256_12] : memref<1x768xf32, #tpu.memory_space<vmem>>, vector<1x32xf32>
    %c0_13 = arith.constant 0 : index
    %c384_14 = arith.constant 384 : index
    %10 = vector.load %arg3[%c0_13, %c384_14] : memref<1x768xf32, #tpu.memory_space<vmem>>, vector<1x128xf32>
    %c0_15 = arith.constant 0 : index
    %c512_16 = arith.constant 512 : index
    %11 = vector.load %arg3[%c0_15, %c512_16] : memref<1x768xf32, #tpu.memory_space<vmem>>, vector<1x32xf32>
    %c0_17 = arith.constant 0 : index
    %c640_18 = arith.constant 640 : index
    %12 = vector.load %arg3[%c0_17, %c640_18] : memref<1x768xf32, #tpu.memory_space<vmem>>, vector<1x128xf32>
    %c0_19 = arith.constant 0 : index
    %c0_20 = arith.constant 0 : index
    %13 = vector.load %arg0[%c0_19, %c0_20] : memref<64x1xi32, #tpu.memory_space<vmem>>, vector<64x1xi32>
    %14 = tpu.iota {dimensions = array<i32: 1>} : vector<64x32xi32>
    %15 = vector.broadcast %13 : vector<64x1xi32> to vector<64x32xi32>
    %16 = arith.cmpi eq, %15, %14 : vector<64x32xi32>
    %17 = arith.extui %16 : vector<64x32xi1> to vector<64x32xi32>
    %18 = arith.sitofp %17 : vector<64x32xi32> to vector<64x32xf32>
    %cst = arith.constant dense<0.000000e+00> : vector<64x32xf32>
    %19 = tpu.matmul %18, %0, %cst {dimension_numbers = #tpu.dot_dimension_numbers<[1], [0], [0], [1], [0, 0, 1, 1], [], []>} : vector<64x32xf32>, vector<32x32xf32>, vector<64x32xf32> -> vector<64x32xf32>
    %cst_21 = arith.constant dense<0.000000e+00> : vector<64x96xf32>
    %20 = tpu.matmul %19, %1, %cst_21 {dimension_numbers = #tpu.dot_dimension_numbers<[1], [0], [0], [1], [0, 0, 1, 1], [], []>} : vector<64x32xf32>, vector<32x96xf32>, vector<64x96xf32> -> vector<64x96xf32>
    %21 = vector.broadcast %7 : vector<1x96xf32> to vector<64x96xf32>
    %22 = arith.addf %20, %21 : vector<64x96xf32>
    %c0_22 = arith.constant 0 : index
    %c0_23 = arith.constant 0 : index
    %23 = vector.load %arg1[%c0_22, %c0_23] : memref<8x1xi32, #tpu.memory_space<vmem>>, vector<8x1xi32>
    %cst_24 = arith.constant 0.000000e+00 : f32
    %24 = vector.broadcast %cst_24 : f32 to vector<8x32xf32>
    %25 = vector.extract_strided_slice %22 {offsets = [0, 0], sizes = [8, 96], strides = [1, 1]} : vector<64x96xf32> to vector<8x96xf32>
    %cst_25 = arith.constant dense<0.000000e+00> : vector<8x96xf32>
    %26 = tpu.matmul %24, %2, %cst_25 {dimension_numbers = #tpu.dot_dimension_numbers<[1], [0], [0], [1], [0, 0, 1, 1], [], []>} : vector<8x32xf32>, vector<32x96xf32>, vector<8x96xf32> -> vector<8x96xf32>
    %27 = vector.extract_strided_slice %25 {offsets = [0, 0], sizes = [8, 32], strides = [1, 1]} : vector<8x96xf32> to vector<8x32xf32>
    %28 = vector.extract_strided_slice %26 {offsets = [0, 0], sizes = [8, 32], strides = [1, 1]} : vector<8x96xf32> to vector<8x32xf32>
    %29 = arith.addf %27, %28 : vector<8x32xf32>
    %30 = arith.negf %29 : vector<8x32xf32>
    %31 = math.exp %30 : vector<8x32xf32>
    %cst_26 = arith.constant 1.000000e+00 : f32
    %32 = vector.broadcast %cst_26 : f32 to vector<8x32xf32>
    %33 = arith.addf %32, %31 : vector<8x32xf32>
    %34 = arith.divf %32, %33 : vector<8x32xf32>
    %35 = vector.extract_strided_slice %25 {offsets = [0, 32], sizes = [8, 32], strides = [1, 1]} : vector<8x96xf32> to vector<8x32xf32>
    %36 = vector.extract_strided_slice %26 {offsets = [0, 32], sizes = [8, 32], strides = [1, 1]} : vector<8x96xf32> to vector<8x32xf32>
    %37 = arith.addf %35, %36 : vector<8x32xf32>
    %38 = arith.negf %37 : vector<8x32xf32>
    %39 = math.exp %38 : vector<8x32xf32>
    %cst_27 = arith.constant 1.000000e+00 : f32
    %40 = vector.broadcast %cst_27 : f32 to vector<8x32xf32>
    %41 = arith.addf %40, %39 : vector<8x32xf32>
    %42 = arith.divf %40, %41 : vector<8x32xf32>
    %43 = vector.extract_strided_slice %25 {offsets = [0, 64], sizes = [8, 32], strides = [1, 1]} : vector<8x96xf32> to vector<8x32xf32>
    %44 = vector.extract_strided_slice %26 {offsets = [0, 64], sizes = [8, 32], strides = [1, 1]} : vector<8x96xf32> to vector<8x32xf32>
    %45 = vector.broadcast %8 : vector<1x32xf32> to vector<8x32xf32>
    %46 = arith.addf %44, %45 : vector<8x32xf32>
    %47 = arith.mulf %34, %46 : vector<8x32xf32>
    %48 = arith.addf %43, %47 : vector<8x32xf32>
    %49 = math.tanh %48 : vector<8x32xf32>
    %50 = arith.subf %24, %49 : vector<8x32xf32>
    %51 = arith.mulf %42, %50 : vector<8x32xf32>
    %52 = arith.addf %49, %51 : vector<8x32xf32>
    %c0_i32 = arith.constant 0 : i32
    %53 = vector.broadcast %c0_i32 : i32 to vector<8x1xi32>
    %54 = arith.cmpi sgt, %23, %53 : vector<8x1xi32>
    %55 = vector.shape_cast %54 : vector<8x1xi1> to vector<8x1xi1>
    %56 = vector.broadcast %55 : vector<8x1xi1> to vector<8x32xi1>
    %57 = arith.select %56, %52, %24 : vector<8x32xi1>, vector<8x32xf32>
    %58 = vector.extract_strided_slice %22 {offsets = [8, 0], sizes = [8, 96], strides = [1, 1]} : vector<64x96xf32> to vector<8x96xf32>
    %cst_28 = arith.constant dense<0.000000e+00> : vector<8x96xf32>
    %59 = tpu.matmul %57, %2, %cst_28 {dimension_numbers = #tpu.dot_dimension_numbers<[1], [0], [0], [1], [0, 0, 1, 1], [], []>} : vector<8x32xf32>, vector<32x96xf32>, vector<8x96xf32> -> vector<8x96xf32>
    %60 = vector.extract_strided_slice %58 {offsets = [0, 0], sizes = [8, 32], strides = [1, 1]} : vector<8x96xf32> to vector<8x32xf32>
    %61 = vector.extract_strided_slice %59 {offsets = [0, 0], sizes = [8, 32], strides = [1, 1]} : vector<8x96xf32> to vector<8x32xf32>
    %62 = arith.addf %60, %61 : vector<8x32xf32>
    %63 = arith.negf %62 : vector<8x32xf32>
    %64 = math.exp %63 : vector<8x32xf32>
    %cst_29 = arith.constant 1.000000e+00 : f32
    %65 = vector.broadcast %cst_29 : f32 to vector<8x32xf32>
    %66 = arith.addf %65, %64 : vector<8x32xf32>
    %67 = arith.divf %65, %66 : vector<8x32xf32>
    %68 = vector.extract_strided_slice %58 {offsets = [0, 32], sizes = [8, 32], strides = [1, 1]} : vector<8x96xf32> to vector<8x32xf32>
    %69 = vector.extract_strided_slice %59 {offsets = [0, 32], sizes = [8, 32], strides = [1, 1]} : vector<8x96xf32> to vector<8x32xf32>
    %70 = arith.addf %68, %69 : vector<8x32xf32>
    %71 = arith.negf %70 : vector<8x32xf32>
    %72 = math.exp %71 : vector<8x32xf32>
    %cst_30 = arith.constant 1.000000e+00 : f32
    %73 = vector.broadcast %cst_30 : f32 to vector<8x32xf32>
    %74 = arith.addf %73, %72 : vector<8x32xf32>
    %75 = arith.divf %73, %74 : vector<8x32xf32>
    %76 = vector.extract_strided_slice %58 {offsets = [0, 64], sizes = [8, 32], strides = [1, 1]} : vector<8x96xf32> to vector<8x32xf32>
    %77 = vector.extract_strided_slice %59 {offsets = [0, 64], sizes = [8, 32], strides = [1, 1]} : vector<8x96xf32> to vector<8x32xf32>
    %78 = vector.broadcast %8 : vector<1x32xf32> to vector<8x32xf32>
    %79 = arith.addf %77, %78 : vector<8x32xf32>
    %80 = arith.mulf %67, %79 : vector<8x32xf32>
    %81 = arith.addf %76, %80 : vector<8x32xf32>
    %82 = math.tanh %81 : vector<8x32xf32>
    %83 = arith.subf %57, %82 : vector<8x32xf32>
    %84 = arith.mulf %75, %83 : vector<8x32xf32>
    %85 = arith.addf %82, %84 : vector<8x32xf32>
    %c1_i32 = arith.constant 1 : i32
    %86 = vector.broadcast %c1_i32 : i32 to vector<8x1xi32>
    %87 = arith.cmpi sgt, %23, %86 : vector<8x1xi32>
    %88 = vector.shape_cast %87 : vector<8x1xi1> to vector<8x1xi1>
    %89 = vector.broadcast %88 : vector<8x1xi1> to vector<8x32xi1>
    %90 = arith.select %89, %85, %57 : vector<8x32xi1>, vector<8x32xf32>
    %91 = vector.extract_strided_slice %22 {offsets = [16, 0], sizes = [8, 96], strides = [1, 1]} : vector<64x96xf32> to vector<8x96xf32>
    %cst_31 = arith.constant dense<0.000000e+00> : vector<8x96xf32>
    %92 = tpu.matmul %90, %2, %cst_31 {dimension_numbers = #tpu.dot_dimension_numbers<[1], [0], [0], [1], [0, 0, 1, 1], [], []>} : vector<8x32xf32>, vector<32x96xf32>, vector<8x96xf32> -> vector<8x96xf32>
    %93 = vector.extract_strided_slice %91 {offsets = [0, 0], sizes = [8, 32], strides = [1, 1]} : vector<8x96xf32> to vector<8x32xf32>
    %94 = vector.extract_strided_slice %92 {offsets = [0, 0], sizes = [8, 32], strides = [1, 1]} : vector<8x96xf32> to vector<8x32xf32>
    %95 = arith.addf %93, %94 : vector<8x32xf32>
    %96 = arith.negf %95 : vector<8x32xf32>
    %97 = math.exp %96 : vector<8x32xf32>
    %cst_32 = arith.constant 1.000000e+00 : f32
    %98 = vector.broadcast %cst_32 : f32 to vector<8x32xf32>
    %99 = arith.addf %98, %97 : vector<8x32xf32>
    %100 = arith.divf %98, %99 : vector<8x32xf32>
    %101 = vector.extract_strided_slice %91 {offsets = [0, 32], sizes = [8, 32], strides = [1, 1]} : vector<8x96xf32> to vector<8x32xf32>
    %102 = vector.extract_strided_slice %92 {offsets = [0, 32], sizes = [8, 32], strides = [1, 1]} : vector<8x96xf32> to vector<8x32xf32>
    %103 = arith.addf %101, %102 : vector<8x32xf32>
    %104 = arith.negf %103 : vector<8x32xf32>
    %105 = math.exp %104 : vector<8x32xf32>
    %cst_33 = arith.constant 1.000000e+00 : f32
    %106 = vector.broadcast %cst_33 : f32 to vector<8x32xf32>
    %107 = arith.addf %106, %105 : vector<8x32xf32>
    %108 = arith.divf %106, %107 : vector<8x32xf32>
    %109 = vector.extract_strided_slice %91 {offsets = [0, 64], sizes = [8, 32], strides = [1, 1]} : vector<8x96xf32> to vector<8x32xf32>
    %110 = vector.extract_strided_slice %92 {offsets = [0, 64], sizes = [8, 32], strides = [1, 1]} : vector<8x96xf32> to vector<8x32xf32>
    %111 = vector.broadcast %8 : vector<1x32xf32> to vector<8x32xf32>
    %112 = arith.addf %110, %111 : vector<8x32xf32>
    %113 = arith.mulf %100, %112 : vector<8x32xf32>
    %114 = arith.addf %109, %113 : vector<8x32xf32>
    %115 = math.tanh %114 : vector<8x32xf32>
    %116 = arith.subf %90, %115 : vector<8x32xf32>
    %117 = arith.mulf %108, %116 : vector<8x32xf32>
    %118 = arith.addf %115, %117 : vector<8x32xf32>
    %c2_i32 = arith.constant 2 : i32
    %119 = vector.broadcast %c2_i32 : i32 to vector<8x1xi32>
    %120 = arith.cmpi sgt, %23, %119 : vector<8x1xi32>
    %121 = vector.shape_cast %120 : vector<8x1xi1> to vector<8x1xi1>
    %122 = vector.broadcast %121 : vector<8x1xi1> to vector<8x32xi1>
    %123 = arith.select %122, %118, %90 : vector<8x32xi1>, vector<8x32xf32>
    %124 = vector.extract_strided_slice %22 {offsets = [24, 0], sizes = [8, 96], strides = [1, 1]} : vector<64x96xf32> to vector<8x96xf32>
    %cst_34 = arith.constant dense<0.000000e+00> : vector<8x96xf32>
    %125 = tpu.matmul %123, %2, %cst_34 {dimension_numbers = #tpu.dot_dimension_numbers<[1], [0], [0], [1], [0, 0, 1, 1], [], []>} : vector<8x32xf32>, vector<32x96xf32>, vector<8x96xf32> -> vector<8x96xf32>
    %126 = vector.extract_strided_slice %124 {offsets = [0, 0], sizes = [8, 32], strides = [1, 1]} : vector<8x96xf32> to vector<8x32xf32>
    %127 = vector.extract_strided_slice %125 {offsets = [0, 0], sizes = [8, 32], strides = [1, 1]} : vector<8x96xf32> to vector<8x32xf32>
    %128 = arith.addf %126, %127 : vector<8x32xf32>
    %129 = arith.negf %128 : vector<8x32xf32>
    %130 = math.exp %129 : vector<8x32xf32>
    %cst_35 = arith.constant 1.000000e+00 : f32
    %131 = vector.broadcast %cst_35 : f32 to vector<8x32xf32>
    %132 = arith.addf %131, %130 : vector<8x32xf32>
    %133 = arith.divf %131, %132 : vector<8x32xf32>
    %134 = vector.extract_strided_slice %124 {offsets = [0, 32], sizes = [8, 32], strides = [1, 1]} : vector<8x96xf32> to vector<8x32xf32>
    %135 = vector.extract_strided_slice %125 {offsets = [0, 32], sizes = [8, 32], strides = [1, 1]} : vector<8x96xf32> to vector<8x32xf32>
    %136 = arith.addf %134, %135 : vector<8x32xf32>
    %137 = arith.negf %136 : vector<8x32xf32>
    %138 = math.exp %137 : vector<8x32xf32>
    %cst_36 = arith.constant 1.000000e+00 : f32
    %139 = vector.broadcast %cst_36 : f32 to vector<8x32xf32>
    %140 = arith.addf %139, %138 : vector<8x32xf32>
    %141 = arith.divf %139, %140 : vector<8x32xf32>
    %142 = vector.extract_strided_slice %124 {offsets = [0, 64], sizes = [8, 32], strides = [1, 1]} : vector<8x96xf32> to vector<8x32xf32>
    %143 = vector.extract_strided_slice %125 {offsets = [0, 64], sizes = [8, 32], strides = [1, 1]} : vector<8x96xf32> to vector<8x32xf32>
    %144 = vector.broadcast %8 : vector<1x32xf32> to vector<8x32xf32>
    %145 = arith.addf %143, %144 : vector<8x32xf32>
    %146 = arith.mulf %133, %145 : vector<8x32xf32>
    %147 = arith.addf %142, %146 : vector<8x32xf32>
    %148 = math.tanh %147 : vector<8x32xf32>
    %149 = arith.subf %123, %148 : vector<8x32xf32>
    %150 = arith.mulf %141, %149 : vector<8x32xf32>
    %151 = arith.addf %148, %150 : vector<8x32xf32>
    %c3_i32 = arith.constant 3 : i32
    %152 = vector.broadcast %c3_i32 : i32 to vector<8x1xi32>
    %153 = arith.cmpi sgt, %23, %152 : vector<8x1xi32>
    %154 = vector.shape_cast %153 : vector<8x1xi1> to vector<8x1xi1>
    %155 = vector.broadcast %154 : vector<8x1xi1> to vector<8x32xi1>
    %156 = arith.select %155, %151, %123 : vector<8x32xi1>, vector<8x32xf32>
    %157 = vector.extract_strided_slice %22 {offsets = [32, 0], sizes = [8, 96], strides = [1, 1]} : vector<64x96xf32> to vector<8x96xf32>
    %cst_37 = arith.constant dense<0.000000e+00> : vector<8x96xf32>
    %158 = tpu.matmul %156, %2, %cst_37 {dimension_numbers = #tpu.dot_dimension_numbers<[1], [0], [0], [1], [0, 0, 1, 1], [], []>} : vector<8x32xf32>, vector<32x96xf32>, vector<8x96xf32> -> vector<8x96xf32>
    %159 = vector.extract_strided_slice %157 {offsets = [0, 0], sizes = [8, 32], strides = [1, 1]} : vector<8x96xf32> to vector<8x32xf32>
    %160 = vector.extract_strided_slice %158 {offsets = [0, 0], sizes = [8, 32], strides = [1, 1]} : vector<8x96xf32> to vector<8x32xf32>
    %161 = arith.addf %159, %160 : vector<8x32xf32>
    %162 = arith.negf %161 : vector<8x32xf32>
    %163 = math.exp %162 : vector<8x32xf32>
    %cst_38 = arith.constant 1.000000e+00 : f32
    %164 = vector.broadcast %cst_38 : f32 to vector<8x32xf32>
    %165 = arith.addf %164, %163 : vector<8x32xf32>
    %166 = arith.divf %164, %165 : vector<8x32xf32>
    %167 = vector.extract_strided_slice %157 {offsets = [0, 32], sizes = [8, 32], strides = [1, 1]} : vector<8x96xf32> to vector<8x32xf32>
    %168 = vector.extract_strided_slice %158 {offsets = [0, 32], sizes = [8, 32], strides = [1, 1]} : vector<8x96xf32> to vector<8x32xf32>
    %169 = arith.addf %167, %168 : vector<8x32xf32>
    %170 = arith.negf %169 : vector<8x32xf32>
    %171 = math.exp %170 : vector<8x32xf32>
    %cst_39 = arith.constant 1.000000e+00 : f32
    %172 = vector.broadcast %cst_39 : f32 to vector<8x32xf32>
    %173 = arith.addf %172, %171 : vector<8x32xf32>
    %174 = arith.divf %172, %173 : vector<8x32xf32>
    %175 = vector.extract_strided_slice %157 {offsets = [0, 64], sizes = [8, 32], strides = [1, 1]} : vector<8x96xf32> to vector<8x32xf32>
    %176 = vector.extract_strided_slice %158 {offsets = [0, 64], sizes = [8, 32], strides = [1, 1]} : vector<8x96xf32> to vector<8x32xf32>
    %177 = vector.broadcast %8 : vector<1x32xf32> to vector<8x32xf32>
    %178 = arith.addf %176, %177 : vector<8x32xf32>
    %179 = arith.mulf %166, %178 : vector<8x32xf32>
    %180 = arith.addf %175, %179 : vector<8x32xf32>
    %181 = math.tanh %180 : vector<8x32xf32>
    %182 = arith.subf %156, %181 : vector<8x32xf32>
    %183 = arith.mulf %174, %182 : vector<8x32xf32>
    %184 = arith.addf %181, %183 : vector<8x32xf32>
    %c4_i32 = arith.constant 4 : i32
    %185 = vector.broadcast %c4_i32 : i32 to vector<8x1xi32>
    %186 = arith.cmpi sgt, %23, %185 : vector<8x1xi32>
    %187 = vector.shape_cast %186 : vector<8x1xi1> to vector<8x1xi1>
    %188 = vector.broadcast %187 : vector<8x1xi1> to vector<8x32xi1>
    %189 = arith.select %188, %184, %156 : vector<8x32xi1>, vector<8x32xf32>
    %190 = vector.extract_strided_slice %22 {offsets = [40, 0], sizes = [8, 96], strides = [1, 1]} : vector<64x96xf32> to vector<8x96xf32>
    %cst_40 = arith.constant dense<0.000000e+00> : vector<8x96xf32>
    %191 = tpu.matmul %189, %2, %cst_40 {dimension_numbers = #tpu.dot_dimension_numbers<[1], [0], [0], [1], [0, 0, 1, 1], [], []>} : vector<8x32xf32>, vector<32x96xf32>, vector<8x96xf32> -> vector<8x96xf32>
    %192 = vector.extract_strided_slice %190 {offsets = [0, 0], sizes = [8, 32], strides = [1, 1]} : vector<8x96xf32> to vector<8x32xf32>
    %193 = vector.extract_strided_slice %191 {offsets = [0, 0], sizes = [8, 32], strides = [1, 1]} : vector<8x96xf32> to vector<8x32xf32>
    %194 = arith.addf %192, %193 : vector<8x32xf32>
    %195 = arith.negf %194 : vector<8x32xf32>
    %196 = math.exp %195 : vector<8x32xf32>
    %cst_41 = arith.constant 1.000000e+00 : f32
    %197 = vector.broadcast %cst_41 : f32 to vector<8x32xf32>
    %198 = arith.addf %197, %196 : vector<8x32xf32>
    %199 = arith.divf %197, %198 : vector<8x32xf32>
    %200 = vector.extract_strided_slice %190 {offsets = [0, 32], sizes = [8, 32], strides = [1, 1]} : vector<8x96xf32> to vector<8x32xf32>
    %201 = vector.extract_strided_slice %191 {offsets = [0, 32], sizes = [8, 32], strides = [1, 1]} : vector<8x96xf32> to vector<8x32xf32>
    %202 = arith.addf %200, %201 : vector<8x32xf32>
    %203 = arith.negf %202 : vector<8x32xf32>
    %204 = math.exp %203 : vector<8x32xf32>
    %cst_42 = arith.constant 1.000000e+00 : f32
    %205 = vector.broadcast %cst_42 : f32 to vector<8x32xf32>
    %206 = arith.addf %205, %204 : vector<8x32xf32>
    %207 = arith.divf %205, %206 : vector<8x32xf32>
    %208 = vector.extract_strided_slice %190 {offsets = [0, 64], sizes = [8, 32], strides = [1, 1]} : vector<8x96xf32> to vector<8x32xf32>
    %209 = vector.extract_strided_slice %191 {offsets = [0, 64], sizes = [8, 32], strides = [1, 1]} : vector<8x96xf32> to vector<8x32xf32>
    %210 = vector.broadcast %8 : vector<1x32xf32> to vector<8x32xf32>
    %211 = arith.addf %209, %210 : vector<8x32xf32>
    %212 = arith.mulf %199, %211 : vector<8x32xf32>
    %213 = arith.addf %208, %212 : vector<8x32xf32>
    %214 = math.tanh %213 : vector<8x32xf32>
    %215 = arith.subf %189, %214 : vector<8x32xf32>
    %216 = arith.mulf %207, %215 : vector<8x32xf32>
    %217 = arith.addf %214, %216 : vector<8x32xf32>
    %c5_i32 = arith.constant 5 : i32
    %218 = vector.broadcast %c5_i32 : i32 to vector<8x1xi32>
    %219 = arith.cmpi sgt, %23, %218 : vector<8x1xi32>
    %220 = vector.shape_cast %219 : vector<8x1xi1> to vector<8x1xi1>
    %221 = vector.broadcast %220 : vector<8x1xi1> to vector<8x32xi1>
    %222 = arith.select %221, %217, %189 : vector<8x32xi1>, vector<8x32xf32>
    %223 = vector.extract_strided_slice %22 {offsets = [48, 0], sizes = [8, 96], strides = [1, 1]} : vector<64x96xf32> to vector<8x96xf32>
    %cst_43 = arith.constant dense<0.000000e+00> : vector<8x96xf32>
    %224 = tpu.matmul %222, %2, %cst_43 {dimension_numbers = #tpu.dot_dimension_numbers<[1], [0], [0], [1], [0, 0, 1, 1], [], []>} : vector<8x32xf32>, vector<32x96xf32>, vector<8x96xf32> -> vector<8x96xf32>
    %225 = vector.extract_strided_slice %223 {offsets = [0, 0], sizes = [8, 32], strides = [1, 1]} : vector<8x96xf32> to vector<8x32xf32>
    %226 = vector.extract_strided_slice %224 {offsets = [0, 0], sizes = [8, 32], strides = [1, 1]} : vector<8x96xf32> to vector<8x32xf32>
    %227 = arith.addf %225, %226 : vector<8x32xf32>
    %228 = arith.negf %227 : vector<8x32xf32>
    %229 = math.exp %228 : vector<8x32xf32>
    %cst_44 = arith.constant 1.000000e+00 : f32
    %230 = vector.broadcast %cst_44 : f32 to vector<8x32xf32>
    %231 = arith.addf %230, %229 : vector<8x32xf32>
    %232 = arith.divf %230, %231 : vector<8x32xf32>
    %233 = vector.extract_strided_slice %223 {offsets = [0, 32], sizes = [8, 32], strides = [1, 1]} : vector<8x96xf32> to vector<8x32xf32>
    %234 = vector.extract_strided_slice %224 {offsets = [0, 32], sizes = [8, 32], strides = [1, 1]} : vector<8x96xf32> to vector<8x32xf32>
    %235 = arith.addf %233, %234 : vector<8x32xf32>
    %236 = arith.negf %235 : vector<8x32xf32>
    %237 = math.exp %236 : vector<8x32xf32>
    %cst_45 = arith.constant 1.000000e+00 : f32
    %238 = vector.broadcast %cst_45 : f32 to vector<8x32xf32>
    %239 = arith.addf %238, %237 : vector<8x32xf32>
    %240 = arith.divf %238, %239 : vector<8x32xf32>
    %241 = vector.extract_strided_slice %223 {offsets = [0, 64], sizes = [8, 32], strides = [1, 1]} : vector<8x96xf32> to vector<8x32xf32>
    %242 = vector.extract_strided_slice %224 {offsets = [0, 64], sizes = [8, 32], strides = [1, 1]} : vector<8x96xf32> to vector<8x32xf32>
    %243 = vector.broadcast %8 : vector<1x32xf32> to vector<8x32xf32>
    %244 = arith.addf %242, %243 : vector<8x32xf32>
    %245 = arith.mulf %232, %244 : vector<8x32xf32>
    %246 = arith.addf %241, %245 : vector<8x32xf32>
    %247 = math.tanh %246 : vector<8x32xf32>
    %248 = arith.subf %222, %247 : vector<8x32xf32>
    %249 = arith.mulf %240, %248 : vector<8x32xf32>
    %250 = arith.addf %247, %249 : vector<8x32xf32>
    %c6_i32 = arith.constant 6 : i32
    %251 = vector.broadcast %c6_i32 : i32 to vector<8x1xi32>
    %252 = arith.cmpi sgt, %23, %251 : vector<8x1xi32>
    %253 = vector.shape_cast %252 : vector<8x1xi1> to vector<8x1xi1>
    %254 = vector.broadcast %253 : vector<8x1xi1> to vector<8x32xi1>
    %255 = arith.select %254, %250, %222 : vector<8x32xi1>, vector<8x32xf32>
    %256 = vector.extract_strided_slice %22 {offsets = [56, 0], sizes = [8, 96], strides = [1, 1]} : vector<64x96xf32> to vector<8x96xf32>
    %cst_46 = arith.constant dense<0.000000e+00> : vector<8x96xf32>
    %257 = tpu.matmul %255, %2, %cst_46 {dimension_numbers = #tpu.dot_dimension_numbers<[1], [0], [0], [1], [0, 0, 1, 1], [], []>} : vector<8x32xf32>, vector<32x96xf32>, vector<8x96xf32> -> vector<8x96xf32>
    %258 = vector.extract_strided_slice %256 {offsets = [0, 0], sizes = [8, 32], strides = [1, 1]} : vector<8x96xf32> to vector<8x32xf32>
    %259 = vector.extract_strided_slice %257 {offsets = [0, 0], sizes = [8, 32], strides = [1, 1]} : vector<8x96xf32> to vector<8x32xf32>
    %260 = arith.addf %258, %259 : vector<8x32xf32>
    %261 = arith.negf %260 : vector<8x32xf32>
    %262 = math.exp %261 : vector<8x32xf32>
    %cst_47 = arith.constant 1.000000e+00 : f32
    %263 = vector.broadcast %cst_47 : f32 to vector<8x32xf32>
    %264 = arith.addf %263, %262 : vector<8x32xf32>
    %265 = arith.divf %263, %264 : vector<8x32xf32>
    %266 = vector.extract_strided_slice %256 {offsets = [0, 32], sizes = [8, 32], strides = [1, 1]} : vector<8x96xf32> to vector<8x32xf32>
    %267 = vector.extract_strided_slice %257 {offsets = [0, 32], sizes = [8, 32], strides = [1, 1]} : vector<8x96xf32> to vector<8x32xf32>
    %268 = arith.addf %266, %267 : vector<8x32xf32>
    %269 = arith.negf %268 : vector<8x32xf32>
    %270 = math.exp %269 : vector<8x32xf32>
    %cst_48 = arith.constant 1.000000e+00 : f32
    %271 = vector.broadcast %cst_48 : f32 to vector<8x32xf32>
    %272 = arith.addf %271, %270 : vector<8x32xf32>
    %273 = arith.divf %271, %272 : vector<8x32xf32>
    %274 = vector.extract_strided_slice %256 {offsets = [0, 64], sizes = [8, 32], strides = [1, 1]} : vector<8x96xf32> to vector<8x32xf32>
    %275 = vector.extract_strided_slice %257 {offsets = [0, 64], sizes = [8, 32], strides = [1, 1]} : vector<8x96xf32> to vector<8x32xf32>
    %276 = vector.broadcast %8 : vector<1x32xf32> to vector<8x32xf32>
    %277 = arith.addf %275, %276 : vector<8x32xf32>
    %278 = arith.mulf %265, %277 : vector<8x32xf32>
    %279 = arith.addf %274, %278 : vector<8x32xf32>
    %280 = math.tanh %279 : vector<8x32xf32>
    %281 = arith.subf %255, %280 : vector<8x32xf32>
    %282 = arith.mulf %273, %281 : vector<8x32xf32>
    %283 = arith.addf %280, %282 : vector<8x32xf32>
    %c7_i32 = arith.constant 7 : i32
    %284 = vector.broadcast %c7_i32 : i32 to vector<8x1xi32>
    %285 = arith.cmpi sgt, %23, %284 : vector<8x1xi32>
    %286 = vector.shape_cast %285 : vector<8x1xi1> to vector<8x1xi1>
    %287 = vector.broadcast %286 : vector<8x1xi1> to vector<8x32xi1>
    %288 = arith.select %287, %283, %255 : vector<8x32xi1>, vector<8x32xf32>
    %cst_49 = arith.constant dense<0.000000e+00> : vector<8x32xf32>
    %289 = tpu.matmul %288, %3, %cst_49 {dimension_numbers = #tpu.dot_dimension_numbers<[1], [0], [0], [1], [0, 0, 1, 1], [], []>} : vector<8x32xf32>, vector<32x32xf32>, vector<8x32xf32> -> vector<8x32xf32>
    %290 = vector.broadcast %9 : vector<1x32xf32> to vector<8x32xf32>
    %291 = arith.addf %289, %290 : vector<8x32xf32>
    %292 = math.tanh %291 : vector<8x32xf32>
    %cst_50 = arith.constant dense<0.000000e+00> : vector<8x128xf32>
    %293 = tpu.matmul %292, %4, %cst_50 {dimension_numbers = #tpu.dot_dimension_numbers<[1], [0], [0], [1], [0, 0, 1, 1], [], []>} : vector<8x32xf32>, vector<32x128xf32>, vector<8x128xf32> -> vector<8x128xf32>
    %294 = vector.broadcast %10 : vector<1x128xf32> to vector<8x128xf32>
    %295 = arith.addf %293, %294 : vector<8x128xf32>
    %296 = vector.extract_strided_slice %295 {offsets = [0, 0], sizes = [8, 32], strides = [1, 1]} : vector<8x128xf32> to vector<8x32xf32>
    %297 = vector.extract_strided_slice %295 {offsets = [0, 32], sizes = [8, 32], strides = [1, 1]} : vector<8x128xf32> to vector<8x32xf32>
    %298 = vector.extract_strided_slice %295 {offsets = [0, 64], sizes = [8, 32], strides = [1, 1]} : vector<8x128xf32> to vector<8x32xf32>
    %299 = vector.extract_strided_slice %295 {offsets = [0, 96], sizes = [8, 32], strides = [1, 1]} : vector<8x128xf32> to vector<8x32xf32>
    %300 = tpu.concatenate %296, %297, %298, %299 in 0 : vector<8x32xf32>, vector<8x32xf32>, vector<8x32xf32>, vector<8x32xf32> -> vector<32x32xf32>
    %cst_51 = arith.constant dense<0.000000e+00> : vector<32x32xf32>
    %301 = tpu.matmul %300, %5, %cst_51 {dimension_numbers = #tpu.dot_dimension_numbers<[1], [0], [0], [1], [0, 0, 1, 1], [], []>} : vector<32x32xf32>, vector<32x32xf32>, vector<32x32xf32> -> vector<32x32xf32>
    %302 = vector.broadcast %11 : vector<1x32xf32> to vector<32x32xf32>
    %303 = arith.addf %301, %302 : vector<32x32xf32>
    %304 = math.tanh %303 : vector<32x32xf32>
    %cst_52 = arith.constant dense<0.000000e+00> : vector<32x128xf32>
    %305 = tpu.matmul %304, %6, %cst_52 {dimension_numbers = #tpu.dot_dimension_numbers<[1], [0], [0], [1], [0, 0, 1, 1], [], []>} : vector<32x32xf32>, vector<32x128xf32>, vector<32x128xf32> -> vector<32x128xf32>
    %306 = vector.broadcast %12 : vector<1x128xf32> to vector<32x128xf32>
    %307 = arith.addf %305, %306 : vector<32x128xf32>
    %c0_53 = arith.constant 0 : index
    %c0_54 = arith.constant 0 : index
    %308 = vector.load %arg4[%c0_53, %c0_54] : memref<32x128xf32, #tpu.memory_space<vmem>>, vector<32x128xf32>
    tpu.vector_store %arg4[%c0_53, %c0_54], %307 {strides = array<i32>} : memref<32x128xf32, #tpu.memory_space<vmem>>, vector<32x128xf32>,
    return
  }
}

</mosaic_0001>

<bundles_post_ra>
// kernel: _lambda_.1
= control target key start
LH: loop header
LB: loop body
LE: loop exit
PB: predicated region body
PF: predicated region fallthrough
CT: control target
= control target key end

     0   :  { %9 = vsyncpa [#allocation3], 0  ;;  %s1172_s18 = smov [#allocation2]   ;;  %s1173_s20 = smov 896   ;;  %s1442_s0 = inlined_call_operand.vmem [shape: s32[64,1], index: 0, kind: input, shape index: {}]   ;;  %s1443_s1 = inlined_call_operand.vmem [shape: s32[8,1], index: 1, kind: input, shape index: {}]   ;;  %s1444_s2 = inlined_call_operand.hbm [shape: f32[32,896], index: 2, kind: input, shape index: {}]   ;;  %s1445_s3 = inlined_call_operand.vmem [shape: f32[1,768], index: 3, kind: input, shape index: {}]   ;;  %s1446_s4 = inlined_call_operand.vmem [shape: f32[32,128], index: 4, kind: output, shape index: {}]  }
   0x1   :  { %s18_s17 = sshll.u32 %s1444_s2, 4  ;;  %s20_s19 = sshll.u32 %s1172_s18, 4  ;;  %s19_s17 = int_to_ptr.hbm [resolvable:$true] %s18_s17  ;;  %s21_s19 = int_to_ptr.vmem [resolvable:$true] %s20_s19 }
   0x2   :  { %s1174_s21 = smov 56  }
   0x3   :  { %26 = dma.hbm_to_vmem [thread:$0]  %s19_s17, 3584, %s21_s19, [#allocation3], %s1173_s20, %s1173_s20, %s1174_s21  }
   0x4   :  { %1170 = dma.done.wait [#allocation3], 3584  }
   0x5   :  { %1171 = vsyncadd [#allocation3], 4294963712  ;;  %v1175_v0 = vmov 0   ;;  %v67_v1 = vld [vmem:[%s1442_s0] sm:$0xff]  ;;  %v36_v2 = vld [vmem:[#allocation2 + $0xa8] sm:$0xff]  ;;  %s1176_s25 = smov 64   ;;  %v75_v15 = vlaneseq }
   0x6   :  { %1079 = vset.pattern.permute.xlu0 %v1175_v0  ;;  %1080 = vset.pattern.permute.xlu2 %v1175_v0  ;;  %v35_v3 = vld [vmem:[#allocation2 + $0x70] sm:$0xff]  ;;  %v34_v4 = vld [vmem:[#allocation2 + $0x38] sm:$0xff]  ;;  %v33_v5 = vld [vmem:[#allocation2] sm:$0xff]  ;;  %v1177_v14 = vmov 0.0   ;;  %vm125_vm0 = vcmask 261120   ;;  %s1178_s30 = smov 96  }
   0x7   :  { %1081 = vset.pattern.permute.xlu1 %v1175_v0  ;;  %78 = vperm.xlu0 %1079, %v67_v1   ;;  %v1214_v6 = vld [vmem:[#allocation2 + $0xb8] sm:$0xff]  ;;  %v1216_v7 = vld [vmem:[#allocation2 + $0x80] sm:$0xff]  ;;  %v40_v9 = vld [vmem:[#allocation2 + $0xb0] sm:$0xff]  ;;  %v1247_v16 = vand.u32 127, %v75_v15  ;;  %s1179_s7 = smov 32  }
   0x8   :  { %162 = vmatpush.msra.mxu0 %v36_v2  ;;  %275 = vmatpush.msra.mxu2 %v1214_v6  ;;  %v1082_v8 = vld [vmem:[%s1445_s3 + $0x1] ss:$0 sm:$0xff]  ;;  %v1223_v10 = vld [vmem:[#allocation2 + $0x48] sm:$0xff]  ;;  %v39_v11 = vld [vmem:[#allocation2 + $0x78] sm:$0xff] }
   0x9   :  { %355 = vmatpush.msra.mxu3 %v1214_v6  ;;  %230 = vmatpush.msra.mxu1 %v40_v9  ;;  %v38_v12 = vld [vmem:[#allocation2 + $0x40] sm:$0xff]  ;;  %v1227_v13 = vld [vmem:[#allocation2 + $0x10] sm:$0xff]  ;;  %v37_v19 = vld [vmem:[#allocation2 + $0x8] sm:$0xff] }
   0xa   :  { %163 = vmatpush.msra.mxu0 %v35_v3  ;;  %276 = vmatpush.msra.mxu2 %v1216_v7  ;;  %v1260_v24 = vld [vmem:[%s1445_s3] ss:$0 sm:$0xff]  ;;  %v68_v43 = vld [vmem:[%s1442_s0 + $0x8] sm:$0xff]  ;;  %v69_v59 = vld [vmem:[%s1442_s0 + $0x10] sm:$0xff] }
   0xb   :  { %231 = vmatpush.msra.mxu1 %v39_v11  ;;  %356 = vmatpush.msra.mxu3 %v1216_v7  ;;  %v1274_v50 = vld [vmem:[%s1443_s1] sm:$0xff] }
   0xc   :  { %164 = vmatpush.msra.mxu0 %v34_v4  ;;  %277 = vmatpush.msra.mxu2 %v1223_v10  ;;  %vm331_vm7 = vcmp.gt.s32.totalorder %v1274_v50, 0  ;;  %vm406_vm9 = vcmp.gt.s32.totalorder %v1274_v50, 1 }
   0xd   :  { %232 = vmatpush.msra.mxu1 %v38_v12  ;;  %357 = vmatpush.msra.mxu3 %v1223_v10  ;;  %v332_v51 = vsel %vm331_vm7, 1, %v1175_v0  ;;  %v407_v60 = vsel %vm406_vm9, 1, %v1175_v0 }
   0xe   :  { %165 = vmatpush.msra.mxu0 %v33_v5  ;;  %278 = vmatpush.msra.mxu2 %v1227_v13 }
   0xf   :  { %305 = vrot.lane.b32.xlu0 %v1082_v8, %s1176_s25  ;;  %279 = vmatmul.f32.vlgmr.msra.gmra.mxu2 %v1177_v14 }
  0x10   :  { %358 = vmatpush.msra.mxu3 %v1227_v13  ;;  %430 = vmatpush.msrb.mxu2 %v1214_v6 }
  0x11   :  { %233 = vmatpush.msra.mxu1 %v37_v19  ;;  %81 = vperm.xlu2 %1080, %v68_v43  }
  0x12   :  { %505 = vmatpush.msrb.mxu3 %v1214_v6  ;;  %431 = vmatpush.msrb.mxu2 %v1216_v7 }
  0x14   :  { %506 = vmatpush.msrb.mxu3 %v1216_v7  ;;  %432 = vmatpush.msrb.mxu2 %v1223_v10 }
  0x16   :  { %507 = vmatpush.msrb.mxu3 %v1223_v10  ;;  %433 = vmatpush.msrb.mxu2 %v1227_v13 }
  0x18   :  { %508 = vmatpush.msrb.mxu3 %v1227_v13  ;;  %580 = vmatpush.msra.mxu2 %v1214_v6 }
  0x1a   :  { %581 = vmatpush.msra.mxu2 %v1216_v7 }
  0x1c   :  { %582 = vmatpush.msra.mxu2 %v1223_v10 }
  0x1e   :  { %583 = vmatpush.msra.mxu2 %v1227_v13 }
  0x6b   :  { %v82_v48 = vpop.permute.xlu2 %81 }
  0x6c   :  { %vm102_vm6 = vcmp.eq.s32.totalorder %v82_v48, %v1247_v16 }
  0x6d   :  { %v1023_v49 = vsel %vm102_vm6, 1.0, %v1177_v14 }
  0x79   :  { %v79_v17 = vpop.permute.xlu0 %78 }
  0x7a   :  { %vm101_vm1 = vcmp.eq.s32.totalorder %v79_v17, %v1247_v16 }
  0x7b   :  { %v1022_v18 = vsel %vm101_vm1, 1.0, %v1177_v14  ;;  %vm481_vm1 = vcmp.gt.s32.totalorder %v1274_v50, 2 }
  0x7c   :  { %1030 = vmatmul.msk.f32.vlgmr.msra.gmra.mxu0 %vm125_vm0, %v1022_v18 }
  0x81   :  { %v1252_v20 = vpop.permute.xlu0 %305 }
  0x84   :  { %1031 = vmatmul.msk.f32.gmra.mxu0 %vm125_vm0, %v1023_v49 }
  0x92   :  { %v280_v21 = vpop.f32.mrf.mxu2 }
  0x93   :  { %v308_v22 = vadd.f32 %v1252_v20, %v280_v21 }
  0x95   :  { %310 = vrot.lane.b32.xlu1 %v308_v22, %s1176_s25 }
  0xf9   :  { %v167_v23 = vpop.f32.mrf.mxu0 }
  0xfa   :  { %1038 = vmatmul.msk.f32.vlgmr.msra.gmra.mxu1 %vm125_vm0, %v167_v23 }
 0x101   :  { %v170_v54 = vpop.f32.mrf.mxu0 }
 0x102   :  { %1039 = vmatmul.msk.f32.gmra.mxu1 %vm125_vm0, %v170_v54 }
 0x107   :  { %v311_v38 = vpop.permute.xlu1 %310 }
 0x177   :  { %v235_v25 = vpop.f32.mrf.mxu1 }
 0x178   :  { %v236_v26 = vadd.f32 %v1260_v24, %v235_v25 }
 0x17a   :  { %v283_v27 = vadd.f32 %v280_v21, %v236_v26 }
 0x17c   :  { %v1046_v28 = vmul.f32 -1.442695, %v283_v27 }
 0x17e   :  { %1088 = vpow2.f32 %v1046_v28 }
 0x17f   :  { %v238_v4 = vpop.f32.mrf.mxu1 }
 0x180   :  { %v239_v5 = vadd.f32 %v1260_v24, %v238_v4 }
 0x184   :  { %v1089_v29 = vpop.eup %1088 }
 0x185   :  { %v287_v30 = vadd.f32 1.0, %v1089_v29 }
 0x187   :  { %1090 = vrcp.f32 %v287_v30  ;;  %v299_v34 = vand.u32 2147483648, %v287_v30  ;;  %v297_v36 = vand.u32 2147483647, %v287_v30  ;;  %vm293_vm3 = vweird.f32 %v287_v30 }
 0x189   :  { %v300_v39 = vor.u32 1.1754944e-38, %v299_v34  ;;  %vm298_vm5 = vcmp.eq.f32.partialorder %v297_v36, 8.507059e+37 }
 0x18d   :  { %v1091_v31 = vpop.eup %1090 }
 0x18e   :  { %v289_v32 = vmul.f32 %v1091_v31, %v287_v30  ;;  %vm294_vm2 = vweird.f32 %v1091_v31 }
 0x18f   :  { %vm295_vm4 = vmor %vm293_vm3, %vm294_vm2 }
 0x190   :  { %v290_v33 = vsub.f32 1.0, %v289_v32 }
 0x192   :  { %v291_v35 = vmul.f32 %v1091_v31, %v290_v33 }
 0x194   :  { %v292_v37 = vadd.f32 %v1091_v31, %v291_v35 }
 0x196   :  { %v296_v40 = vsel %vm295_vm4, %v1091_v31, %v292_v37 }
 0x197   :  { %v301_v41 = vsel %vm298_vm5, %v300_v39, %v296_v40  ;;  %v70_v40 = vld [vmem:[%s1442_s0 + $0x18] sm:$0xff] }
 0x198   :  { %v313_v42 = vmul.f32 %v311_v38, %v301_v41 }
 0x19a   :  { %315 = vrot.lane.b32.xlu1 %v313_v42, %s1176_s25 }
 0x1a2   :  { %334 = vperm.xlu1 %1081, %v332_v51  }
 0x20c   :  { %v316_v44 = vpop.permute.xlu1 %315 }
 0x20d   :  { %v318_v45 = vadd.f32 %v316_v44, %v236_v26 }
 0x20f   :  { %1092 = vtanh.f32 %v318_v45 }
 0x214   :  { %v335_v55 = vpop.permute.xlu1 %334 }
 0x215   :  { %v1093_v46 = vpop.eup %1092  ;;  %vm336_vm8 = vcmp.eq.s32.totalorder %v335_v55, 1 }
 0x216   :  { %v320_v47 = vsub.f32 0.0, %v1093_v46 }
 0x218   :  { %322 = vrot.lane.b32.xlu2 %v320_v47, %s1178_s30 }
 0x272   :  { %v323_v52 = vpop.permute.xlu2 %322 }
 0x273   :  { %v325_v53 = vmul.f32 %v323_v52, %v301_v41  ;;  %v482_v41 = vsel %vm481_vm1, 1, %v1175_v0 }
 0x275   :  { %327 = vrot.lane.b32.xlu0 %v325_v53, %s1179_s7 }
 0x2e7   :  { %v328_v56 = vpop.permute.xlu0 %327 }
 0x2e8   :  { %v330_v57 = vadd.f32 %v1093_v46, %v328_v56 }
 0x2ea   :  { %v337_v58 = vsel %vm336_vm8, %v330_v57, 0.0  ;;  %vm556_vm8 = vcmp.gt.s32.totalorder %v1274_v50, 3 }
 0x2eb   :  { %339 = vrot.lane.b32.xlu2 %v337_v58, %s1176_s25 }
 0x2f3   :  { %84 = vperm.xlu2 %1080, %v69_v59  }
 0x2fb   :  { %409 = vperm.xlu2 %1080, %v407_v60  }
 0x345   :  { %v340_v61 = vpop.permute.xlu2 %339 }
 0x346   :  { %1047 = vmatmul.msk.f32.vlgmr.msra.gmra.mxu3 %vm125_vm0, %v340_v61 }
 0x347   :  { %655 = vmatpush.msra.mxu3 %v1214_v6 }
 0x349   :  { %656 = vmatpush.msra.mxu3 %v1216_v7 }
 0x34b   :  { %657 = vmatpush.msra.mxu3 %v1223_v10 }
 0x34d   :  { %v85_v62 = vpop.permute.xlu2 %84  ;;  %658 = vmatpush.msra.mxu3 %v1227_v13 }
 0x34e   :  { %vm103_vm10 = vcmp.eq.s32.totalorder %v85_v62, %v1247_v16 }
 0x34f   :  { %v1024_v63 = vsel %vm103_vm10, 1.0, %v1177_v14 }
 0x350   :  { %1032 = vmatmul.msk.f32.gmra.mxu0 %vm125_vm0, %v1024_v63 }
 0x355   :  { %v410_v36 = vpop.permute.xlu2 %409 }
 0x356   :  { %vm411_vm15 = vcmp.eq.s32.totalorder %v410_v36, 1 }
 0x3c9   :  { %v360_v1 = vpop.f32.mrf.mxu3 }
 0x3ca   :  { %v383_v2 = vadd.f32 %v360_v1, %v1252_v20  ;;  %v363_v8 = vadd.f32 %v360_v1, %v239_v5 }
 0x3cc   :  { %385 = vrot.lane.b32.xlu0 %v383_v2, %s1176_s25  ;;  %v1048_v9 = vmul.f32 -1.442695, %v363_v8 }
 0x3cd   :  { %v173_v3 = vpop.f32.mrf.mxu0 }
 0x3ce   :  { %1040 = vmatmul.msk.f32.gmra.mxu1 %vm125_vm0, %v173_v3  ;;  %1094 = vpow2.f32 %v1048_v9 }
 0x3d4   :  { %v1095_v11 = vpop.eup %1094 }
 0x3d5   :  { %v367_v12 = vadd.f32 1.0, %v1095_v11 }
 0x3d7   :  { %1096 = vrcp.f32 %v367_v12  ;;  %v379_v22 = vand.u32 2147483648, %v367_v12  ;;  %vm373_vm12 = vweird.f32 %v367_v12  ;;  %v377_v23 = vand.u32 2147483647, %v367_v12 }
 0x3d9   :  { %v380_v26 = vor.u32 1.1754944e-38, %v379_v22  ;;  %vm378_vm14 = vcmp.eq.f32.partialorder %v377_v23, 8.507059e+37  ;;  %v557_v22 = vsel %vm556_vm8, 1, %v1175_v0 }
 0x3dd   :  { %v1097_v15 = vpop.eup %1096 }
 0x3de   :  { %v369_v17 = vmul.f32 %v1097_v15, %v367_v12  ;;  %vm374_vm11 = vweird.f32 %v1097_v15 }
 0x3df   :  { %vm375_vm13 = vmor %vm373_vm12, %vm374_vm11 }
 0x3e0   :  { %v370_v18 = vsub.f32 1.0, %v369_v17 }
 0x3e2   :  { %v371_v19 = vmul.f32 %v1097_v15, %v370_v18 }
 0x3e4   :  { %v372_v21 = vadd.f32 %v1097_v15, %v371_v19 }
 0x3e6   :  { %v376_v25 = vsel %vm375_vm13, %v1097_v15, %v372_v21  ;;  %v71_v21 = vld [vmem:[%s1442_s0 + $0x20] sm:$0xff] }
 0x3e7   :  { %v381_v28 = vsel %vm378_vm14, %v380_v26, %v376_v25 }
 0x43e   :  { %v386_v27 = vpop.permute.xlu0 %385 }
 0x43f   :  { %v388_v29 = vmul.f32 %v386_v27, %v381_v28 }
 0x441   :  { %390 = vrot.lane.b32.xlu1 %v388_v29, %s1176_s25 }
 0x44b   :  { %v241_v48 = vpop.f32.mrf.mxu1 }
 0x44c   :  { %v242_v49 = vadd.f32 %v1260_v24, %v241_v48 }
 0x4b3   :  { %v391_v30 = vpop.permute.xlu1 %390 }
 0x4b4   :  { %v393_v31 = vadd.f32 %v391_v30, %v239_v5 }
 0x4b6   :  { %1098 = vtanh.f32 %v393_v31 }
 0x4bc   :  { %v1099_v32 = vpop.eup %1098 }
 0x4bd   :  { %v395_v33 = vsub.f32 %v337_v58, %v1099_v32 }
 0x4bf   :  { %397 = vrot.lane.b32.xlu0 %v395_v33, %s1178_s30 }
 0x531   :  { %v398_v34 = vpop.permute.xlu0 %397 }
 0x532   :  { %v400_v35 = vmul.f32 %v398_v34, %v381_v28 }
 0x534   :  { %402 = vrot.lane.b32.xlu1 %v400_v35, %s1179_s7 }
 0x5a6   :  { %v403_v37 = vpop.permute.xlu1 %402 }
 0x5a7   :  { %v405_v38 = vadd.f32 %v1099_v32, %v403_v37 }
 0x5a9   :  { %v412_v39 = vsel %vm411_vm15, %v405_v38, %v337_v58  ;;  %vm631_vm15 = vcmp.gt.s32.totalorder %v1274_v50, 4 }
 0x5aa   :  { %414 = vrot.lane.b32.xlu0 %v412_v39, %s1176_s25 }
 0x5b2   :  { %87 = vperm.xlu0 %1079, %v70_v40  }
 0x5ba   :  { %484 = vperm.xlu0 %1079, %v482_v41  }
 0x61c   :  { %v415_v42 = vpop.permute.xlu0 %414 }
 0x61d   :  { %1049 = vmatmul.msk.f32.vlgmr.msrb.gmra.mxu2 %vm125_vm0, %v415_v42 }
 0x61e   :  { %730 = vmatpush.msrb.mxu2 %v1214_v6 }
 0x620   :  { %731 = vmatpush.msrb.mxu2 %v1216_v7 }
 0x622   :  { %732 = vmatpush.msrb.mxu2 %v1223_v10 }
 0x624   :  { %v88_v43 = vpop.permute.xlu0 %87  ;;  %733 = vmatpush.msrb.mxu2 %v1227_v13 }
 0x625   :  { %vm104_vm2 = vcmp.eq.s32.totalorder %v88_v43, %v1247_v16 }
 0x626   :  { %v1025_v44 = vsel %vm104_vm2, 1.0, %v1177_v14 }
 0x627   :  { %1033 = vmatmul.msk.f32.gmra.mxu0 %vm125_vm0, %v1025_v44 }
 0x62c   :  { %v485_v15 = vpop.permute.xlu0 %484 }
 0x62d   :  { %vm486_vm7 = vcmp.eq.s32.totalorder %v485_v15, 1 }
 0x6a0   :  { %v435_v45 = vpop.f32.mrf.mxu2 }
 0x6a1   :  { %v458_v46 = vadd.f32 %v435_v45, %v1252_v20  ;;  %v438_v51 = vadd.f32 %v435_v45, %v242_v49 }
 0x6a3   :  { %460 = vrot.lane.b32.xlu1 %v458_v46, %s1176_s25  ;;  %v1050_v52 = vmul.f32 -1.442695, %v438_v51 }
 0x6a4   :  { %v176_v47 = vpop.f32.mrf.mxu0 }
 0x6a5   :  { %1041 = vmatmul.msk.f32.gmra.mxu1 %vm125_vm0, %v176_v47  ;;  %1100 = vpow2.f32 %v1050_v52 }
 0x6ab   :  { %v1101_v53 = vpop.eup %1100 }
 0x6ac   :  { %v442_v54 = vadd.f32 1.0, %v1101_v53 }
 0x6ae   :  { %1102 = vrcp.f32 %v442_v54  ;;  %v454_v60 = vand.u32 2147483648, %v442_v54  ;;  %vm448_vm4 = vweird.f32 %v442_v54  ;;  %v452_v61 = vand.u32 2147483647, %v442_v54 }
 0x6b0   :  { %v455_v63 = vor.u32 1.1754944e-38, %v454_v60  ;;  %vm453_vm6 = vcmp.eq.f32.partialorder %v452_v61, 8.507059e+37 }
 0x6b4   :  { %v1103_v55 = vpop.eup %1102 }
 0x6b5   :  { %v444_v56 = vmul.f32 %v1103_v55, %v442_v54  ;;  %vm449_vm3 = vweird.f32 %v1103_v55 }
 0x6b6   :  { %vm450_vm5 = vmor %vm448_vm4, %vm449_vm3 }
 0x6b7   :  { %v445_v57 = vsub.f32 1.0, %v444_v56  ;;  %v632_v56 = vsel %vm631_vm15, 1, %v1175_v0 }
 0x6b9   :  { %v446_v58 = vmul.f32 %v1103_v55, %v445_v57 }
 0x6bb   :  { %v447_v59 = vadd.f32 %v1103_v55, %v446_v58 }
 0x6bd   :  { %v451_v62 = vsel %vm450_vm5, %v1103_v55, %v447_v59  ;;  %v72_v55 = vld [vmem:[%s1442_s0 + $0x28] sm:$0xff] }
 0x6be   :  { %v456_v2 = vsel %vm453_vm6, %v455_v63, %v451_v62 }
 0x715   :  { %v461_v1 = vpop.permute.xlu1 %460 }
 0x716   :  { %v463_v3 = vmul.f32 %v461_v1, %v456_v2 }
 0x718   :  { %465 = vrot.lane.b32.xlu2 %v463_v3, %s1176_s25 }
 0x772   :  { %v466_v4 = vpop.permute.xlu2 %465 }
 0x773   :  { %v468_v5 = vadd.f32 %v466_v4, %v242_v49 }
 0x775   :  { %1104 = vtanh.f32 %v468_v5 }
 0x77b   :  { %v1105_v8 = vpop.eup %1104 }
 0x77c   :  { %v470_v9 = vsub.f32 %v412_v39, %v1105_v8 }
 0x77e   :  { %472 = vrot.lane.b32.xlu1 %v470_v9, %s1178_s30 }
 0x7f0   :  { %v473_v11 = vpop.permute.xlu1 %472 }
 0x7f1   :  { %v475_v12 = vmul.f32 %v473_v11, %v456_v2 }
 0x7f3   :  { %477 = vrot.lane.b32.xlu2 %v475_v12, %s1179_s7 }
 0x84d   :  { %v478_v17 = vpop.permute.xlu2 %477 }
 0x84e   :  { %v480_v18 = vadd.f32 %v1105_v8, %v478_v17 }
 0x850   :  { %v487_v19 = vsel %vm486_vm7, %v480_v18, %v412_v39  ;;  %vm706_vm7 = vcmp.gt.s32.totalorder %v1274_v50, 5 }
 0x851   :  { %489 = vrot.lane.b32.xlu1 %v487_v19, %s1176_s25 }
 0x859   :  { %90 = vperm.xlu1 %1081, %v71_v21  }
 0x861   :  { %559 = vperm.xlu1 %1081, %v557_v22  }
 0x8c3   :  { %v490_v23 = vpop.permute.xlu1 %489 }
 0x8c4   :  { %1051 = vmatmul.msk.f32.vlgmr.msrb.gmra.mxu3 %vm125_vm0, %v490_v23 }
 0x8c5   :  { %805 = vmatpush.msrb.mxu3 %v1214_v6  ;;  %v244_v6 = vpop.f32.mrf.mxu1 }
 0x8c7   :  { %806 = vmatpush.msrb.mxu3 %v1216_v7  ;;  %v245_v7 = vadd.f32 %v1260_v24, %v244_v6 }
 0x8c9   :  { %807 = vmatpush.msrb.mxu3 %v1223_v10 }
 0x8cb   :  { %v91_v25 = vpop.permute.xlu1 %90  ;;  %808 = vmatpush.msrb.mxu3 %v1227_v13 }
 0x8cc   :  { %vm105_vm9 = vcmp.eq.s32.totalorder %v91_v25, %v1247_v16 }
 0x8cd   :  { %v1026_v26 = vsel %vm105_vm9, 1.0, %v1177_v14 }
 0x8ce   :  { %1034 = vmatmul.msk.f32.gmra.mxu0 %vm125_vm0, %v1026_v26 }
 0x8d3   :  { %v560_v51 = vpop.permute.xlu1 %559 }
 0x8d4   :  { %vm561_vm14 = vcmp.eq.s32.totalorder %v560_v51, 1 }
 0x947   :  { %v510_v27 = vpop.f32.mrf.mxu3 }
 0x948   :  { %v533_v28 = vadd.f32 %v510_v27, %v1252_v20  ;;  %v513_v10 = vadd.f32 %v510_v27, %v245_v7 }
 0x94a   :  { %535 = vrot.lane.b32.xlu2 %v533_v28, %s1176_s25  ;;  %v1052_v30 = vmul.f32 -1.442695, %v513_v10 }
 0x94b   :  { %v179_v29 = vpop.f32.mrf.mxu0 }
 0x94c   :  { %1042 = vmatmul.msk.f32.gmra.mxu1 %vm125_vm0, %v179_v29  ;;  %1106 = vpow2.f32 %v1052_v30 }
 0x952   :  { %v1107_v13 = vpop.eup %1106 }
 0x953   :  { %v517_v31 = vadd.f32 1.0, %v1107_v13 }
 0x955   :  { %1108 = vrcp.f32 %v517_v31  ;;  %v529_v37 = vand.u32 2147483648, %v517_v31  ;;  %vm523_vm11 = vweird.f32 %v517_v31  ;;  %v527_v38 = vand.u32 2147483647, %v517_v31 }
 0x957   :  { %v530_v40 = vor.u32 1.1754944e-38, %v529_v37  ;;  %vm528_vm13 = vcmp.eq.f32.partialorder %v527_v38, 8.507059e+37 }
 0x95b   :  { %v1109_v32 = vpop.eup %1108 }
 0x95c   :  { %v519_v33 = vmul.f32 %v1109_v32, %v517_v31  ;;  %vm524_vm10 = vweird.f32 %v1109_v32 }
 0x95d   :  { %vm525_vm12 = vmor %vm523_vm11, %vm524_vm10 }
 0x95e   :  { %v520_v34 = vsub.f32 1.0, %v519_v33  ;;  %v707_v33 = vsel %vm706_vm7, 1, %v1175_v0 }
 0x960   :  { %v521_v35 = vmul.f32 %v1109_v32, %v520_v34 }
 0x962   :  { %v522_v36 = vadd.f32 %v1109_v32, %v521_v35 }
 0x964   :  { %v526_v39 = vsel %vm525_vm12, %v1109_v32, %v522_v36  ;;  %v73_v32 = vld [vmem:[%s1442_s0 + $0x30] sm:$0xff] }
 0x965   :  { %v531_v42 = vsel %vm528_vm13, %v530_v40, %v526_v39 }
 0x9a4   :  { %v536_v41 = vpop.permute.xlu2 %535 }
 0x9a5   :  { %v538_v43 = vmul.f32 %v536_v41, %v531_v42 }
 0x9a7   :  { %540 = vrot.lane.b32.xlu0 %v538_v43, %s1176_s25 }
 0x9c9   :  { %v247_v63 = vpop.f32.mrf.mxu1 }
 0x9ca   :  { %v248_v1 = vadd.f32 %v1260_v24, %v247_v63 }
 0xa19   :  { %v541_v44 = vpop.permute.xlu0 %540 }
 0xa1a   :  { %v543_v45 = vadd.f32 %v541_v44, %v245_v7 }
 0xa1c   :  { %1110 = vtanh.f32 %v543_v45 }
 0xa22   :  { %v1111_v46 = vpop.eup %1110 }
 0xa23   :  { %v545_v47 = vsub.f32 %v487_v19, %v1111_v46 }
 0xa25   :  { %547 = vrot.lane.b32.xlu2 %v545_v47, %s1178_s30 }
 0xa7f   :  { %v548_v48 = vpop.permute.xlu2 %547 }
 0xa80   :  { %v550_v49 = vmul.f32 %v548_v48, %v531_v42 }
 0xa82   :  { %552 = vrot.lane.b32.xlu0 %v550_v49, %s1179_s7 }
 0xaf4   :  { %v553_v52 = vpop.permute.xlu0 %552 }
 0xaf5   :  { %v555_v53 = vadd.f32 %v1111_v46, %v553_v52 }
 0xaf7   :  { %v562_v54 = vsel %vm561_vm14, %v555_v53, %v487_v19  ;;  %vm781_vm14 = vcmp.gt.s32.totalorder %v1274_v50, 6 }
 0xaf8   :  { %564 = vrot.lane.b32.xlu2 %v562_v54, %s1176_s25 }
 0xb00   :  { %93 = vperm.xlu2 %1080, %v72_v55  }
 0xb08   :  { %634 = vperm.xlu2 %1080, %v632_v56  }
 0xb52   :  { %v565_v57 = vpop.permute.xlu2 %564 }
 0xb53   :  { %1053 = vmatmul.msk.f32.vlgmr.msra.gmra.mxu2 %vm125_vm0, %v565_v57 }
 0xb5a   :  { %v94_v58 = vpop.permute.xlu2 %93 }
 0xb5b   :  { %vm106_vm1 = vcmp.eq.s32.totalorder %v94_v58, %v1247_v16 }
 0xb5c   :  { %v1027_v59 = vsel %vm106_vm1, 1.0, %v1177_v14 }
 0xb5d   :  { %1035 = vmatmul.msk.f32.gmra.mxu0 %vm125_vm0, %v1027_v59 }
 0xb62   :  { %v635_v10 = vpop.permute.xlu2 %634 }
 0xb63   :  { %vm636_vm6 = vcmp.eq.s32.totalorder %v635_v10, 1 }
 0xbd6   :  { %v585_v60 = vpop.f32.mrf.mxu2 }
 0xbd7   :  { %v608_v61 = vadd.f32 %v585_v60, %v1252_v20  ;;  %v588_v2 = vadd.f32 %v585_v60, %v248_v1 }
 0xbd9   :  { %610 = vrot.lane.b32.xlu0 %v608_v61, %s1176_s25  ;;  %v1054_v3 = vmul.f32 -1.442695, %v588_v2 }
 0xbda   :  { %v182_v62 = vpop.f32.mrf.mxu0 }
 0xbdb   :  { %1043 = vmatmul.msk.f32.gmra.mxu1 %vm125_vm0, %v182_v62  ;;  %1112 = vpow2.f32 %v1054_v3 }
 0xbe1   :  { %v1113_v4 = vpop.eup %1112 }
 0xbe2   :  { %v592_v5 = vadd.f32 1.0, %v1113_v4 }
 0xbe4   :  { %1114 = vrcp.f32 %v592_v5  ;;  %v604_v17 = vand.u32 2147483648, %v592_v5  ;;  %vm598_vm3 = vweird.f32 %v592_v5  ;;  %v602_v18 = vand.u32 2147483647, %v592_v5 }
 0xbe6   :  { %v605_v21 = vor.u32 1.1754944e-38, %v604_v17  ;;  %vm603_vm5 = vcmp.eq.f32.partialorder %v602_v18, 8.507059e+37 }
 0xbea   :  { %v1115_v8 = vpop.eup %1114 }
 0xbeb   :  { %v594_v9 = vmul.f32 %v1115_v8, %v592_v5  ;;  %vm599_vm2 = vweird.f32 %v1115_v8 }
 0xbec   :  { %vm600_vm4 = vmor %vm598_vm3, %vm599_vm2 }
 0xbed   :  { %v595_v11 = vsub.f32 1.0, %v594_v9  ;;  %v782_v9 = vsel %vm781_vm14, 1, %v1175_v0 }
 0xbef   :  { %v596_v12 = vmul.f32 %v1115_v8, %v595_v11 }
 0xbf1   :  { %v597_v15 = vadd.f32 %v1115_v8, %v596_v12 }
 0xbf3   :  { %v601_v19 = vsel %vm600_vm4, %v1115_v8, %v597_v15  ;;  %v74_v8 = vld [vmem:[%s1442_s0 + $0x38] sm:$0xff] }
 0xbf4   :  { %v606_v23 = vsel %vm603_vm5, %v605_v21, %v601_v19 }
 0xc4b   :  { %v611_v22 = vpop.permute.xlu0 %610 }
 0xc4c   :  { %v613_v25 = vmul.f32 %v611_v22, %v606_v23 }
 0xc4e   :  { %615 = vrot.lane.b32.xlu1 %v613_v25, %s1176_s25 }
 0xc58   :  { %v250_v40 = vpop.f32.mrf.mxu1 }
 0xc59   :  { %v251_v41 = vadd.f32 %v1260_v24, %v250_v40 }
 0xcc0   :  { %v616_v26 = vpop.permute.xlu1 %615 }
 0xcc1   :  { %v618_v27 = vadd.f32 %v616_v26, %v248_v1 }
 0xcc3   :  { %1116 = vtanh.f32 %v618_v27 }
 0xcc9   :  { %v1117_v28 = vpop.eup %1116 }
 0xcca   :  { %v620_v29 = vsub.f32 %v562_v54, %v1117_v28 }
 0xccc   :  { %622 = vrot.lane.b32.xlu0 %v620_v29, %s1178_s30 }
 0xd3e   :  { %v623_v6 = vpop.permute.xlu0 %622 }
 0xd3f   :  { %v625_v7 = vmul.f32 %v623_v6, %v606_v23 }
 0xd41   :  { %627 = vrot.lane.b32.xlu1 %v625_v7, %s1179_s7 }
 0xdb3   :  { %v628_v30 = vpop.permute.xlu1 %627 }
 0xdb4   :  { %v630_v13 = vadd.f32 %v1117_v28, %v628_v30 }
 0xdb6   :  { %v637_v31 = vsel %vm636_vm6, %v630_v13, %v562_v54 }
 0xdb7   :  { %639 = vrot.lane.b32.xlu0 %v637_v31, %s1176_s25 }
 0xdbf   :  { %96 = vperm.xlu0 %1079, %v73_v32  }
 0xdc7   :  { %709 = vperm.xlu0 %1079, %v707_v33  }
 0xe29   :  { %v640_v34 = vpop.permute.xlu0 %639 }
 0xe2a   :  { %1055 = vmatmul.msk.f32.vlgmr.msra.gmra.mxu3 %vm125_vm0, %v640_v34 }
 0xe31   :  { %v97_v35 = vpop.permute.xlu0 %96 }
 0xe32   :  { %vm107_vm8 = vcmp.eq.s32.totalorder %v97_v35, %v1247_v16 }
 0xe33   :  { %v1028_v36 = vsel %vm107_vm8, 1.0, %v1177_v14 }
 0xe34   :  { %1036 = vmatmul.msk.f32.gmra.mxu0 %vm125_vm0, %v1028_v36 }
 0xe39   :  { %v710_v2 = vpop.permute.xlu0 %709 }
 0xe3a   :  { %vm711_vm13 = vcmp.eq.s32.totalorder %v710_v2, 1 }
 0xead   :  { %v660_v37 = vpop.f32.mrf.mxu3 }
 0xeae   :  { %v683_v38 = vadd.f32 %v660_v37, %v1252_v20  ;;  %v663_v42 = vadd.f32 %v660_v37, %v251_v41 }
 0xeb0   :  { %685 = vrot.lane.b32.xlu1 %v683_v38, %s1176_s25  ;;  %v1056_v43 = vmul.f32 -1.442695, %v663_v42 }
 0xeb1   :  { %v185_v39 = vpop.f32.mrf.mxu0 }
 0xeb2   :  { %1044 = vmatmul.msk.f32.gmra.mxu1 %vm125_vm0, %v185_v39  ;;  %1118 = vpow2.f32 %v1056_v43 }
 0xeb8   :  { %v1119_v44 = vpop.eup %1118 }
 0xeb9   :  { %v667_v45 = vadd.f32 1.0, %v1119_v44 }
 0xebb   :  { %1120 = vrcp.f32 %v667_v45  ;;  %v679_v52 = vand.u32 2147483648, %v667_v45  ;;  %vm673_vm10 = vweird.f32 %v667_v45  ;;  %v677_v53 = vand.u32 2147483647, %v667_v45 }
 0xebd   :  { %v680_v55 = vor.u32 1.1754944e-38, %v679_v52  ;;  %vm678_vm12 = vcmp.eq.f32.partialorder %v677_v53, 8.507059e+37 }
 0xec1   :  { %v1121_v46 = vpop.eup %1120 }
 0xec2   :  { %v669_v47 = vmul.f32 %v1121_v46, %v667_v45  ;;  %vm674_vm9 = vweird.f32 %v1121_v46 }
 0xec3   :  { %vm675_vm11 = vmor %vm673_vm10, %vm674_vm9  ;;  %vm856_vm10 = vcmp.gt.s32.totalorder %v1274_v50, 7  ;;  %v45_v50 = vld [vmem:[#allocation2 + $0x18] sm:$0xff] }
 0xec4   :  { %v670_v48 = vsub.f32 1.0, %v669_v47 }
 0xec6   :  { %v671_v49 = vmul.f32 %v1121_v46, %v670_v48 }
 0xec8   :  { %v672_v51 = vadd.f32 %v1121_v46, %v671_v49 }
 0xeca   :  { %v676_v54 = vsel %vm675_vm11, %v1121_v46, %v672_v51 }
 0xecb   :  { %v681_v57 = vsel %vm678_vm12, %v680_v55, %v676_v54 }
 0xf22   :  { %v686_v56 = vpop.permute.xlu1 %685 }
 0xf23   :  { %v688_v58 = vmul.f32 %v686_v56, %v681_v57 }
 0xf25   :  { %690 = vrot.lane.b32.xlu2 %v688_v58, %s1176_s25 }
 0xf2f   :  { %v253_v21 = vpop.f32.mrf.mxu1 }
 0xf30   :  { %v254_v22 = vadd.f32 %v1260_v24, %v253_v21 }
 0xf7f   :  { %v691_v59 = vpop.permute.xlu2 %690 }
 0xf80   :  { %v693_v60 = vadd.f32 %v691_v59, %v251_v41 }
 0xf82   :  { %1122 = vtanh.f32 %v693_v60 }
 0xf88   :  { %v1123_v61 = vpop.eup %1122 }
 0xf89   :  { %v695_v62 = vsub.f32 %v637_v31, %v1123_v61 }
 0xf8b   :  { %697 = vrot.lane.b32.xlu1 %v695_v62, %s1178_s30 }
 0xffd   :  { %v698_v63 = vpop.permute.xlu1 %697 }
 0xffe   :  { %v700_v1 = vmul.f32 %v698_v63, %v681_v57 }
0x1000   :  { %702 = vrot.lane.b32.xlu2 %v700_v1, %s1179_s7  ;;  %v857_v1 = vsel %vm856_vm10, 1, %v1175_v0 }
0x105a   :  { %v703_v3 = vpop.permute.xlu2 %702 }
0x105b   :  { %v705_v4 = vadd.f32 %v1123_v61, %v703_v3 }
0x105d   :  { %v712_v5 = vsel %vm711_vm13, %v705_v4, %v637_v31 }
0x105e   :  { %714 = vrot.lane.b32.xlu1 %v712_v5, %s1176_s25 }
0x1066   :  { %99 = vperm.xlu1 %1081, %v74_v8  }
0x106e   :  { %784 = vperm.xlu1 %1081, %v782_v9  }
0x10d0   :  { %v715_v11 = vpop.permute.xlu1 %714 }
0x10d1   :  { %1057 = vmatmul.msk.f32.vlgmr.msrb.gmra.mxu2 %vm125_vm0, %v715_v11  ;;  %v48_v11 = vld [vmem:[#allocation2 + $0xc0] sm:$0xff] }
0x10d2   :  { %883 = vmatpush.msra.mxu2 %v48_v11 }
0x10d8   :  { %v100_v12 = vpop.permute.xlu1 %99 }
0x10d9   :  { %vm108_vm15 = vcmp.eq.s32.totalorder %v100_v12, %v1247_v16  ;;  %v47_v12 = vld [vmem:[#allocation2 + $0x88] sm:$0xff] }
0x10da   :  { %v1029_v15 = vsel %vm108_vm15, 1.0, %v1177_v14  ;;  %884 = vmatpush.msra.mxu2 %v47_v12 }
0x10db   :  { %1037 = vmatmul.msk.f32.gmra.mxu0 %vm125_vm0, %v1029_v15  ;;  %v46_v15 = vld [vmem:[#allocation2 + $0x50] sm:$0xff] }
0x10dc   :  { %885 = vmatpush.msra.mxu2 %v46_v15 }
0x10de   :  { %886 = vmatpush.msra.mxu2 %v45_v50 }
0x10e0   :  { %v785_v40 = vpop.permute.xlu1 %784 }
0x10e1   :  { %vm786_vm5 = vcmp.eq.s32.totalorder %v785_v40, 1 }
0x1154   :  { %v735_v17 = vpop.f32.mrf.mxu2 }
0x1155   :  { %v758_v18 = vadd.f32 %v735_v17, %v1252_v20  ;;  %v738_v23 = vadd.f32 %v735_v17, %v254_v22 }
0x1157   :  { %760 = vrot.lane.b32.xlu2 %v758_v18, %s1176_s25  ;;  %v1058_v25 = vmul.f32 -1.442695, %v738_v23  ;;  %v51_v23 = vld [vmem:[#allocation2 + $0x90] sm:$0xff] }
0x1158   :  { %v188_v19 = vpop.f32.mrf.mxu0 }
0x1159   :  { %1045 = vmatmul.msk.f32.gmra.mxu1 %vm125_vm0, %v188_v19  ;;  %1124 = vpow2.f32 %v1058_v25  ;;  %v50_v25 = vld [vmem:[#allocation2 + $0x58] sm:$0xff] }
0x115f   :  { %v1125_v26 = vpop.eup %1124 }
0x1160   :  { %v742_v16 = vadd.f32 1.0, %v1125_v26  ;;  %v49_v26 = vld [vmem:[#allocation2 + $0x20] sm:$0xff] }
0x1162   :  { %1126 = vrcp.f32 %v742_v16  ;;  %v754_v7 = vand.u32 2147483648, %v742_v16  ;;  %vm748_vm2 = vweird.f32 %v742_v16  ;;  %v752_v10 = vand.u32 2147483647, %v742_v16 }
0x1164   :  { %v755_v13 = vor.u32 1.1754944e-38, %v754_v7  ;;  %vm753_vm4 = vcmp.eq.f32.partialorder %v752_v10, 8.507059e+37  ;;  %v54_v7 = vld [vmem:[#allocation2 + $0x60] sm:$0xff]  ;;  %v53_v10 = vld [vmem:[#allocation2 + $0x28] sm:$0xff] }
0x1168   :  { %v1127_v14 = vpop.eup %1126 }
0x1169   :  { %v744_v27 = vmul.f32 %v1127_v14, %v742_v16  ;;  %vm749_vm1 = vweird.f32 %v1127_v14  ;;  %v56_v16 = vld [vmem:[#allocation2 + $0xd0] sm:$0xff] }
0x116a   :  { %vm750_vm3 = vmor %vm748_vm2, %vm749_vm1  ;;  %948 = vmatpush.msrb.mxu2 %v56_v16 }
0x116b   :  { %v745_v28 = vsub.f32 1.0, %v744_v27  ;;  %v1084_v27 = vld [vmem:[%s1445_s3 + $0x2] ss:$0 sm:$0xff] }
0x116d   :  { %v746_v29 = vmul.f32 %v1127_v14, %v745_v28 }
0x116f   :  { %v747_v6 = vadd.f32 %v1127_v14, %v746_v29 }
0x1171   :  { %v751_v30 = vsel %vm750_vm3, %v1127_v14, %v747_v6  ;;  %v55_v14 = vld [vmem:[#allocation2 + $0x98] sm:$0xff] }
0x1172   :  { %v756_v32 = vsel %vm753_vm4, %v755_v13, %v751_v30  ;;  %949 = vmatpush.msrb.mxu2 %v55_v14  ;;  %v1085_v30 = vld [vmem:[%s1445_s3 + $0x3] ss:$0 sm:$0xff] }
0x1174   :  { %950 = vmatpush.msrb.mxu2 %v54_v7 }
0x1176   :  { %951 = vmatpush.msrb.mxu2 %v53_v10 }
0x11b1   :  { %v761_v31 = vpop.permute.xlu2 %760 }
0x11b2   :  { %v763_v33 = vmul.f32 %v761_v31, %v756_v32 }
0x11b4   :  { %765 = vrot.lane.b32.xlu0 %v763_v33, %s1176_s25  ;;  %v59_v33 = vld [vmem:[#allocation2 + $0xa0] sm:$0xff] }
0x11d6   :  { %v256_v47 = vpop.f32.mrf.mxu1 }
0x11d7   :  { %v257_v48 = vadd.f32 %v1260_v24, %v256_v47 }
0x1226   :  { %v766_v34 = vpop.permute.xlu0 %765 }
0x1227   :  { %v768_v35 = vadd.f32 %v766_v34, %v254_v22  ;;  %v52_v22 = vld [vmem:[#allocation2 + $0xc8] sm:$0xff] }
0x1228   :  { %910 = vmatpush.msra.mxu3 %v52_v22  ;;  %v58_v34 = vld [vmem:[#allocation2 + $0x68] sm:$0xff] }
0x1229   :  { %1128 = vtanh.f32 %v768_v35  ;;  %v57_v35 = vld [vmem:[#allocation2 + $0x30] sm:$0xff] }
0x122a   :  { %911 = vmatpush.msra.mxu3 %v51_v23 }
0x122c   :  { %912 = vmatpush.msra.mxu3 %v50_v25 }
0x122e   :  { %913 = vmatpush.msra.mxu3 %v49_v26 }
0x122f   :  { %v1129_v36 = vpop.eup %1128 }
0x1230   :  { %v770_v37 = vsub.f32 %v712_v5, %v1129_v36 }
0x1232   :  { %772 = vrot.lane.b32.xlu2 %v770_v37, %s1178_s30 }
0x128c   :  { %v773_v38 = vpop.permute.xlu2 %772 }
0x128d   :  { %v775_v39 = vmul.f32 %v773_v38, %v756_v32  ;;  %v60_v32 = vld [vmem:[#allocation2 + $0xd8] sm:$0xff]  ;;  %v1086_v38 = vld [vmem:[%s1445_s3 + $0x4] ss:$0 sm:$0xff] }
0x128f   :  { %777 = vrot.lane.b32.xlu0 %v775_v39, %s1179_s7 }
0x1301   :  { %v778_v41 = vpop.permute.xlu0 %777 }
0x1302   :  { %v780_v42 = vadd.f32 %v1129_v36, %v778_v41 }
0x1304   :  { %v787_v43 = vsel %vm786_vm5, %v780_v42, %v712_v5 }
0x1305   :  { %789 = vrot.lane.b32.xlu2 %v787_v43, %s1176_s25 }
0x135f   :  { %v790_v44 = vpop.permute.xlu2 %789 }
0x1360   :  { %1059 = vmatmul.msk.f32.vlgmr.msrb.gmra.mxu3 %vm125_vm0, %v790_v44 }
0x1361   :  { %996 = vmatpush.msrb.mxu3 %v60_v32 }
0x1363   :  { %997 = vmatpush.msrb.mxu3 %v59_v33 }
0x1365   :  { %998 = vmatpush.msrb.mxu3 %v58_v34 }
0x1367   :  { %999 = vmatpush.msrb.mxu3 %v57_v35 }
0x13e3   :  { %v810_v45 = vpop.f32.mrf.mxu3 }
0x13e4   :  { %v833_v46 = vadd.f32 %v810_v45, %v1252_v20  ;;  %v813_v49 = vadd.f32 %v810_v45, %v257_v48 }
0x13e6   :  { %835 = vrot.lane.b32.xlu0 %v833_v46, %s1176_s25  ;;  %v1060_v51 = vmul.f32 -1.442695, %v813_v49 }
0x13e8   :  { %1130 = vpow2.f32 %v1060_v51 }
0x13ee   :  { %v1131_v52 = vpop.eup %1130 }
0x13ef   :  { %v817_v53 = vadd.f32 1.0, %v1131_v52  ;;  %v1087_v52 = vld [vmem:[%s1445_s3 + $0x5] ss:$0 sm:$0xff] }
0x13f1   :  { %1132 = vrcp.f32 %v817_v53  ;;  %v829_v59 = vand.u32 2147483648, %v817_v53  ;;  %vm823_vm7 = vweird.f32 %v817_v53  ;;  %v827_v20 = vand.u32 2147483647, %v817_v53 }
0x13f3   :  { %v830_v61 = vor.u32 1.1754944e-38, %v829_v59  ;;  %vm828_vm9 = vcmp.eq.f32.partialorder %v827_v20, 8.507059e+37 }
0x13f7   :  { %v1133_v54 = vpop.eup %1132 }
0x13f8   :  { %v819_v55 = vmul.f32 %v1133_v54, %v817_v53  ;;  %vm824_vm6 = vweird.f32 %v1133_v54 }
0x13f9   :  { %vm825_vm8 = vmor %vm823_vm7, %vm824_vm6 }
0x13fa   :  { %v820_v56 = vsub.f32 1.0, %v819_v55 }
0x13fc   :  { %v821_v57 = vmul.f32 %v1133_v54, %v820_v56 }
0x13fe   :  { %v822_v58 = vadd.f32 %v1133_v54, %v821_v57 }
0x1400   :  { %v826_v60 = vsel %vm825_vm8, %v1133_v54, %v822_v58 }
0x1401   :  { %v831_v62 = vsel %vm828_vm9, %v830_v61, %v826_v60 }
0x1458   :  { %v836_v24 = vpop.permute.xlu0 %835 }
0x1459   :  { %v838_v63 = vmul.f32 %v836_v24, %v831_v62 }
0x145b   :  { %840 = vrot.lane.b32.xlu1 %v838_v63, %s1176_s25 }
0x1463   :  { %859 = vperm.xlu1 %1081, %v857_v1  }
0x14cd   :  { %v841_v2 = vpop.permute.xlu1 %840 }
0x14ce   :  { %v843_v3 = vadd.f32 %v841_v2, %v257_v48 }
0x14d0   :  { %1134 = vtanh.f32 %v843_v3 }
0x14d5   :  { %v860_v0 = vpop.permute.xlu1 %859 }
0x14d6   :  { %v1135_v4 = vpop.eup %1134  ;;  %vm861_vm11 = vcmp.eq.s32.totalorder %v860_v0, 1 }
0x14d7   :  { %v845_v5 = vsub.f32 %v787_v43, %v1135_v4 }
0x14d9   :  { %847 = vrot.lane.b32.xlu2 %v845_v5, %s1178_s30 }
0x1533   :  { %v848_v8 = vpop.permute.xlu2 %847 }
0x1534   :  { %v850_v9 = vmul.f32 %v848_v8, %v831_v62 }
0x1536   :  { %852 = vrot.lane.b32.xlu0 %v850_v9, %s1179_s7 }
0x15a8   :  { %v853_v17 = vpop.permute.xlu0 %852 }
0x15a9   :  { %v855_v18 = vadd.f32 %v1135_v4, %v853_v17 }
0x15ab   :  { %v862_v19 = vsel %vm861_vm11, %v855_v18, %v787_v43 }
0x15ac   :  { %867 = vrot.lane.b32.xlu2 %v862_v19, %s1176_s25 }
0x1606   :  { %v868_v21 = vpop.permute.xlu2 %867 }
0x1607   :  { %1061 = vmatmul.msk.f32.vlgmr.msra.gmra.mxu2 %vm125_vm0, %v868_v21 }
0x168a   :  { %v888_v28 = vpop.f32.mrf.mxu2 }
0x168b   :  { %v889_v29 = vadd.f32 %v1084_v27, %v888_v28 }
0x168d   :  { %1136 = vtanh.f32 %v889_v29 }
0x1693   :  { %v1137_v6 = vpop.eup %1136 }
0x1694   :  { %1062 = vmatmul.msk.f32.vlgmr.msra.gmra.mxu3 %vm125_vm0, %v1137_v6 }
0x1717   :  { %v915_v13 = vpop.f32.mrf.mxu3 }
0x1718   :  { %v916_v31 = vadd.f32 %v1085_v30, %v915_v13 }
0x171a   :  { %923 = vrot.lane.b32.xlu2 %v916_v31, %s1179_s7  ;;  %921 = vrot.lane.b32.xlu1 %v916_v31, %s1176_s25 }
0x171b   :  { %919 = vrot.lane.b32.xlu0 %v916_v31, %s1178_s30  ;;  %1063 = vmatmul.msk.f32.vlgmr.msrb.gmra.mxu2 %vm125_vm0, %v916_v31 }
0x1774   :  { %v924_v39 = vpop.permute.xlu2 %923 }
0x178c   :  { %v922_v37 = vpop.permute.xlu1 %921 }
0x178d   :  { %v920_v36 = vpop.permute.xlu0 %919 }
0x178e   :  { %1064 = vmatmul.msk.f32.gmra.mxu2 %vm125_vm0, %v920_v36 }
0x1796   :  { %1065 = vmatmul.msk.f32.gmra.mxu2 %vm125_vm0, %v922_v37 }
0x179e   :  { %v953_v40 = vpop.f32.mrf.mxu2  ;;  %1066 = vmatmul.msk.f32.gmra.mxu2 %vm125_vm0, %v924_v39 }
0x179f   :  { %v954_v41 = vadd.f32 %v1086_v38, %v953_v40 }
0x17a1   :  { %1138 = vtanh.f32 %v954_v41 }
0x17a7   :  { %v1139_v42 = vpop.eup %1138 }
0x17a8   :  { %1067 = vmatmul.msk.f32.vlgmr.msrb.gmra.mxu3 %vm125_vm0, %v1139_v42 }
0x1811   :  { %v956_v43 = vpop.f32.mrf.mxu2 }
0x1812   :  { %v957_v44 = vadd.f32 %v1086_v38, %v956_v43 }
0x1814   :  { %1140 = vtanh.f32 %v957_v44 }
0x1819   :  { %v959_v45 = vpop.f32.mrf.mxu2 }
0x181a   :  { %v1141_v46 = vpop.eup %1140  ;;  %v960_v47 = vadd.f32 %v1086_v38, %v959_v45 }
0x181b   :  { %1068 = vmatmul.msk.f32.gmra.mxu3 %vm125_vm0, %v1141_v46 }
0x181c   :  { %1142 = vtanh.f32 %v960_v47 }
0x1821   :  { %v962_v48 = vpop.f32.mrf.mxu2 }
0x1822   :  { %v1143_v49 = vpop.eup %1142  ;;  %v963_v51 = vadd.f32 %v1086_v38, %v962_v48 }
0x1823   :  { %1069 = vmatmul.msk.f32.gmra.mxu3 %vm125_vm0, %v1143_v49 }
0x1824   :  { %1144 = vtanh.f32 %v963_v51 }
0x182a   :  { %v1145_v53 = vpop.eup %1144 }
0x182b   :  { %v1001_v54 = vpop.f32.mrf.mxu3  ;;  %1070 = vmatmul.msk.f32.gmra.mxu3 %vm125_vm0, %v1145_v53 }
0x182c   :  { %v1002_v55 = vadd.f32 %v1087_v52, %v1001_v54 }
0x182e   :  { %1013 = vst [vmem:[%s1446_s4] sm:$0xff] %v1002_v55 }
0x189e   :  { %v1004_v56 = vpop.f32.mrf.mxu3 }
0x189f   :  { %v1005_v57 = vadd.f32 %v1087_v52, %v1004_v56 }
0x18a1   :  { %1014 = vst [vmem:[%s1446_s4 + $0x8] sm:$0xff] %v1005_v57 }
0x18a6   :  { %v1007_v58 = vpop.f32.mrf.mxu3 }
0x18a7   :  { %v1008_v59 = vadd.f32 %v1087_v52, %v1007_v58 }
0x18a9   :  { %1015 = vst [vmem:[%s1446_s4 + $0x10] sm:$0xff] %v1008_v59 }
0x18ae   :  { %v1010_v20 = vpop.f32.mrf.mxu3 }
0x18af   :  { %v1011_v60 = vadd.f32 %v1087_v52, %v1010_v20 }
0x18b1   :  { %1016 = vst [vmem:[%s1446_s4 + $0x18] sm:$0xff] %v1011_v60 }
0x18b2   :  { %1021 = vsyncpa [#allocation3], 1 }

</bundles_post_ra>
